<compile_context>
chip_gen: v5e
topology: v5e:2x2
jax: 0.10.0
libtpu: 0.0.40
codegen_flags: <defaults>
</compile_context>

<pallas_src>
import jax
import jax.numpy as jnp
import numpy as np
from jax import lax
from jax.experimental import pallas as pl
from jax.experimental.pallas import tpu as pltpu

# ---- problem sizes (small, consistent with the module) -----------------------
T, B = 8, 2          # sequence length, batch (sentences)
VOCAB = 50           # vocab size before the +1 "unknown" row
E = 16               # embedding size
H = 32               # GRU hidden size
H2 = 2 * H           # bidirectional feature size
GATE = 128           # lane-aligned padded per-gate width (>= 2H)
OUT_W = 128          # packed output width: [att(2H) | h_fwd(H) | h_bwd(H)]


# ------------------------------- Pallas kernel --------------------------------
def word_att_kernel(xbi_ref, h0_ref, wi_ref, bi_ref, wh_ref, bh_ref,
                    ww_ref, wb_ref, cw_ref, out_ref):
    SB = h0_ref.shape[0]                 # sentences in this block
    steps = xbi_ref.shape[0] // SB       # sequence length T

    # ---- load GRU weights once (VMEM/vreg resident for the whole block) ------
    wi = wi_ref[...]                     # (2E, 3*GATE)  fused/padded input weights
    bi = bi_ref[...]                     # (1, 3*GATE)
    wh = wh_ref[...]                     # (GATE, 3*GATE) fused/padded hidden weights
    bh = bh_ref[...]                     # (1, 3*GATE)

    # ---- input projections for all T steps & both directions: ONE matmul -----
    # Row (t, j) of xbi is [x_t | x_{T-1-t}] of sentence j; each GATE block has
    # column layout [gate_fwd (H) | gate_bwd (H) | zero pad].
    gi_all = jnp.dot(xbi_ref[...], wi, preferred_element_type=jnp.float32) + bi  # (T*SB, 3*GATE)

    # ---- merged bidirectional GRU recurrence, fully unrolled, all in regs -----
    h = h0_ref[...]                      # (SB, GATE) = [h_fwd | h_bwd | 0 pad]
    hs = []
    for s in range(steps):
        gi = gi_all[s * SB:(s + 1) * SB, :]
        gh = jnp.dot(h, wh, preferred_element_type=jnp.float32) + bh             # (SB, 3*GATE)
        r = jax.nn.sigmoid(gi[:, 0:GATE] + gh[:, 0:GATE])                        # whole-vreg slices
        z = jax.nn.sigmoid(gi[:, GATE:2 * GATE] + gh[:, GATE:2 * GATE])
        n = jnp.tanh(gi[:, 2 * GATE:3 * GATE] + r * gh[:, 2 * GATE:3 * GATE])
        h = (1.0 - z) * n + z * h                                                # pad cols stay 0
        hs.append(h)

    # ---- assemble bidirectional features f after the loop (no VMEM scratch) ---
    # Row (t, j) of f = [h_fwd at position t | h_bwd at position t] of sentence j.
    f = jnp.concatenate(
        [jnp.concatenate([hs[t][:, :H] for t in range(steps)], axis=0),
         jnp.concatenate([hs[steps - 1 - t][:, H:H2] for t in range(steps)], axis=0)],
        axis=-1)                                                                 # (T*SB, 2H)

    # ---- word attention, vectorized over all T*SB rows ------------------------
    u1 = jnp.tanh(jnp.dot(f, ww_ref[...],
                          preferred_element_type=jnp.float32) + wb_ref[...])
    scores = jnp.tanh(jnp.sum(u1 * cw_ref[...], axis=-1, keepdims=True))         # (T*SB, 1)
    # scores are tanh-bounded in [-1, 1] -> exp cannot overflow; max-shift skipped.
    e = jnp.exp(scores)                                                          # (T*SB, 1)

    # ---- softmax-weighted sum over the sequence (linear in SB, unrolled) ------
    num = jnp.zeros((SB, H2), jnp.float32)
    den = jnp.zeros((SB, 1), jnp.float32)
    for t in range(steps):
        et = e[t * SB:(t + 1) * SB, :]
        num = num + f[t * SB:(t + 1) * SB, :] * et
        den = den + et
    att = num * pl.reciprocal(den, approx=True)   # EUP reciprocal (~2^-12 rel err)

    # ---- single lane-dense 128-wide output slab: [att(2H) | h_fwd(H) | h_bwd(H)]
    out_ref[...] = jnp.concatenate([att, h[:, :H2]], axis=-1)


# ------------------------------- wrapper ---------------------------------------
@jax.jit
def word_att_encoder(x_tokens, hidden_state, fused):
    Tq, Bq = x_tokens.shape
    SB = Bq if Bq <= 8 else 8            # sentence-block size (multiple of 8 once batched)
    assert Bq % SB == 0
    nb = Bq // SB

    # Embedding lookup (gather) kept as plain-JAX glue.
    # TODO(synk): fold gather into the kernel via scalar-prefetched token ids.
    xemb = jnp.take(fused['embedding'], x_tokens, axis=0).astype(jnp.float32)    # (T, B, E)

    # Block-major rows; within a block, row (t, j) = [x_t | x_{T-1-t}] of sentence j.
    x_bi = jnp.concatenate([xemb, xemb[::-1]], axis=-1)                          # (T, B, 2E)
    x_bi = x_bi.reshape(Tq, nb, SB, 2 * E).transpose(1, 0, 2, 3).reshape(nb * Tq * SB, 2 * E)

    # Lane-padded carry [h_fwd | h_bwd | 0].
    h0 = jnp.concatenate([hidden_state[0], hidden_state[1],
                          jnp.zeros((Bq, GATE - H2), jnp.float32)], axis=-1)     # (B, GATE)

    inputs = (x_bi, h0, fused['wi'], fused['bi'], fused['wh'], fused['bh'],
              fused['word_weight'], fused['word_bias'], fused['context_weight'])

    def const(shape):                    # weights: DMA'd once, VMEM resident across grid
        return pl.BlockSpec(shape, lambda i: (0, 0))

    out = pl.pallas_call(
        word_att_kernel,
        out_shape=jax.ShapeDtypeStruct((Bq, OUT_W), jnp.float32),
        grid_spec=pltpu.PrefetchScalarGridSpec(
            num_scalar_prefetch=0,
            grid=(nb,),                                           # sentence blocks
            in_specs=[
                pl.BlockSpec((Tq * SB, 2 * E), lambda i: (i, 0)),  # per-block bi-directional input
                pl.BlockSpec((SB, GATE), lambda i: (i, 0)),        # per-block padded carry
                const((2 * E, 3 * GATE)),                          # fused W_in
                const((1, 3 * GATE)),                              # fused b_in
                const((GATE, 3 * GATE)),                           # fused W_h
                const((1, 3 * GATE)),                              # fused b_h
                const((H2, H2)),                                   # word_weight
                const((1, H2)),                                    # word_bias
                const((1, H2)),                                    # context_weight
            ],
            out_specs=pl.BlockSpec((SB, OUT_W), lambda i: (i, 0)),
        ),
        compiler_params=pltpu.CompilerParams(
            dimension_semantics=("parallel",)),                    # v7x: 2 TCs
    )(*inputs)

    att = out[:, :H2][None]                                                   # (1, B, 2H)
    h_out = jnp.stack([out[:, H2:H2 + H], out[:, H2 + H:H2 + 2 * H]], axis=0)  # (2, B, H)
    return att, h_out


# ---------------- weight fusion (hoisted out of the per-call path) --------------
def fuse_gru_params(p):
    """Fuse & lane-pad the bidirectional GRU weights ONCE at init time."""
    def bd_in(w):   # (2, E, H) -> (2E, GATE): block-diag over directions + zero lane pad
        m = jnp.zeros((2 * E, GATE), jnp.float32)
        m = m.at[:E, :H].set(w[0])
        m = m.at[E:, H:H2].set(w[1])
        return m

    def bd_h(w):    # (2, H, H) -> (GATE, GATE): rows >= 2H are zero so padded carry stays 0
        m = jnp.zeros((GATE, GATE), jnp.float32)
        m = m.at[:H, :H].set(w[0])
        m = m.at[H:H2, H:H2].set(w[1])
        return m

    def bias(bt):   # (2, 1, H) -> (1, GATE)
        m = jnp.zeros((1, GATE), jnp.float32)
        m = m.at[:, :H].set(bt[0])
        m = m.at[:, H:H2].set(bt[1])
        return m

    return dict(
        embedding=p['embedding'],
        wi=jnp.concatenate([bd_in(p['wir']), bd_in(p['wiz']), bd_in(p['win'])], axis=1),
        bi=jnp.concatenate([bias(p['bir']), bias(p['biz']), bias(p['bin'])], axis=1),
        wh=jnp.concatenate([bd_h(p['whr']), bd_h(p['whz']), bd_h(p['whn'])], axis=1),
        bh=jnp.concatenate([bias(p['bhr']), bias(p['bhz']), bias(p['bhn'])], axis=1),
        word_weight=p['word_weight'], word_bias=p['word_bias'],
        context_weight=p['context_weight'],
    )


# --------------------------- deterministic parameters --------------------------
def init_params(key):
    ks = jax.random.split(key, 16)
    bound = 1.0 / np.sqrt(H)        # PyTorch GRU default init: U(-1/sqrt(H), 1/sqrt(H))

    def u(k, shape):
        return jax.random.uniform(k, shape, jnp.float32, -bound, bound)

    emb = jax.random.normal(ks[0], (VOCAB, E), jnp.float32) * 0.1
    emb = jnp.concatenate([jnp.zeros((1, E), jnp.float32), emb], axis=0)  # unknown row 0

    return dict(
        embedding=emb,
        # bidirectional GRU, per-gate weights stored input-major: (dir, in_dim, H)
        wir=u(ks[1], (2, E, H)), wiz=u(ks[2], (2, E, H)), win=u(ks[3], (2, E, H)),
        whr=u(ks[4], (2, H, H)), whz=u(ks[5], (2, H, H)), whn=u(ks[6], (2, H, H)),
        bir=u(ks[7], (2, 1, H)), biz=u(ks[8], (2, 1, H)), bin=u(ks[9], (2, 1, H)),
        bhr=u(ks[10], (2, 1, H)), bhz=u(ks[11], (2, 1, H)), bhn=u(ks[12], (2, 1, H)),
        # attention params: normal(0, 0.05) as in _create_weights;
        # word_bias is uninitialized in torch -> small normal here too.
        word_weight=jax.random.normal(ks[13], (H2, H2), jnp.float32) * 0.05,
        word_bias=jax.random.normal(ks[14], (1, H2), jnp.float32) * 0.05,
        # context_weight is (2H, 1) in torch; stored as (1, 2H) (same math via
        # elementwise-mul + lane reduction).
        context_weight=jax.random.normal(ks[15], (1, H2), jnp.float32) * 0.05,
    )


# ------------------------------ pure-JAX reference ------------------------------
def reference_forward(x_tokens, hidden_state, p):
    xemb = jnp.take(p['embedding'], x_tokens, axis=0).astype(jnp.float32)  # (T,B,E)

    def cell(x_t, h, d):
        gi_r = x_t @ p['wir'][d] + p['bir'][d]
        gi_z = x_t @ p['wiz'][d] + p['biz'][d]
        gi_n = x_t @ p['win'][d] + p['bin'][d]
        gh_r = h @ p['whr'][d] + p['bhr'][d]
        gh_z = h @ p['whz'][d] + p['bhz'][d]
        gh_n = h @ p['whn'][d] + p['bhn'][d]
        r = jax.nn.sigmoid(gi_r + gh_r)
        z = jax.nn.sigmoid(gi_z + gh_z)
        n = jnp.tanh(gi_n + r * gh_n)
        return (1.0 - z) * n + z * h

    def run_dir(d, h0, xs):
        def step(h, x_t):
            h = cell(x_t, h, d)
            return h, h
        return lax.scan(step, h0, xs)

    h_f, hs_f = run_dir(0, hidden_state[0], xemb)
    h_b, hs_b = run_dir(1, hidden_state[1], xemb[::-1])
    hs_b = hs_b[::-1]
    f = jnp.concatenate([hs_f, hs_b], axis=-1)                       # (T, B, 2H)

    u1 = jnp.tanh(jnp.einsum('tbd,de->tbe', f, p['word_weight']) + p['word_bias'])
    s = jnp.tanh(jnp.sum(u1 * p['context_weight'], axis=-1))         # (T, B)
    alpha = jax.nn.softmax(s, axis=0)                                # softmax over seq
    out = jnp.sum(f * alpha[:, :, None], axis=0)[None]               # (1, B, 2H)
    h_out = jnp.stack([h_f, h_b], axis=0)                            # (2, B, H)
    return out, h_out


# ----------------------------------- main ---------------------------------------
if __name__ == "__main__":
    key = jax.random.PRNGKey(0)
    kp, kx, kh = jax.random.split(key, 3)
    params = init_params(kp)
    fused = fuse_gru_params(params)        # hoisted: computed once, not per forward
    jax.block_until_ready(fused)

    x = jax.random.randint(kx, (T, B), 0, VOCAB + 1, dtype=jnp.int32)   # token ids
    h0 = jax.random.normal(kh, (2, B, H), jnp.float32) * 0.1            # hidden_state

    out, h_out = word_att_encoder(x, h0, fused)
    jax.block_until_ready((out, h_out))

    assert out.shape == (1, B, H2) and h_out.shape == (2, B, H)

    ref_out, ref_h = reference_forward(x, h0, params)
    np.testing.assert_allclose(np.asarray(out), np.asarray(ref_out), rtol=5e-3, atol=5e-3)
    np.testing.assert_allclose(np.asarray(h_out), np.asarray(ref_h), rtol=5e-3, atol=5e-3)

    print("KERNEL_OK")
</pallas_src>

<mosaic_0001>
module attributes {stable_mosaic.version = 11 : i64} {
  func.func @word_att_kernel(%arg0: i32, %arg1: memref<16x32xf32, #tpu.memory_space<vmem>>, %arg2: memref<2x128xf32, #tpu.memory_space<vmem>>, %arg3: memref<32x384xf32, #tpu.memory_space<vmem>>, %arg4: memref<1x384xf32, #tpu.memory_space<vmem>>, %arg5: memref<128x384xf32, #tpu.memory_space<vmem>>, %arg6: memref<1x384xf32, #tpu.memory_space<vmem>>, %arg7: memref<64x64xf32, #tpu.memory_space<vmem>>, %arg8: memref<1x64xf32, #tpu.memory_space<vmem>>, %arg9: memref<1x64xf32, #tpu.memory_space<vmem>>, %arg10: memref<2x128xf32, #tpu.memory_space<vmem>>) attributes {dimension_semantics = [#tpu.dimension_semantics<parallel>], iteration_bounds = array<i64: 1>, scalar_prefetch = 0 : i64, scratch_operands = 0 : i64, tpu.core_type = #tpu.core_type<tc>, window_params = [{transform_indices = @transform_0, window_bounds = array<i64: 16, 32>}, {transform_indices = @transform_1, window_bounds = array<i64: 2, 128>}, {pipeline_mode = #tpu.pipeline_mode<synchronous>, transform_indices = @transform_2, window_bounds = array<i64: 32, 384>}, {pipeline_mode = #tpu.pipeline_mode<synchronous>, transform_indices = @transform_3, window_bounds = array<i64: 1, 384>}, {pipeline_mode = #tpu.pipeline_mode<synchronous>, transform_indices = @transform_4, window_bounds = array<i64: 128, 384>}, {pipeline_mode = #tpu.pipeline_mode<synchronous>, transform_indices = @transform_5, window_bounds = array<i64: 1, 384>}, {pipeline_mode = #tpu.pipeline_mode<synchronous>, transform_indices = @transform_6, window_bounds = array<i64: 64, 64>}, {pipeline_mode = #tpu.pipeline_mode<synchronous>, transform_indices = @transform_7, window_bounds = array<i64: 1, 64>}, {pipeline_mode = #tpu.pipeline_mode<synchronous>, transform_indices = @transform_8, window_bounds = array<i64: 1, 64>}, {transform_indices = @transform_9, window_bounds = array<i64: 2, 128>}]} {
    %c0 = arith.constant 0 : index
    %c0_0 = arith.constant 0 : index
    %0 = vector.load %arg3[%c0, %c0_0] : memref<32x384xf32, #tpu.memory_space<vmem>>, vector<32x384xf32>
    %c0_1 = arith.constant 0 : index
    %c0_2 = arith.constant 0 : index
    %1 = vector.load %arg4[%c0_1, %c0_2] : memref<1x384xf32, #tpu.memory_space<vmem>>, vector<1x384xf32>
    %c0_3 = arith.constant 0 : index
    %c0_4 = arith.constant 0 : index
    %2 = vector.load %arg5[%c0_3, %c0_4] : memref<128x384xf32, #tpu.memory_space<vmem>>, vector<128x384xf32>
    %c0_5 = arith.constant 0 : index
    %c0_6 = arith.constant 0 : index
    %3 = vector.load %arg6[%c0_5, %c0_6] : memref<1x384xf32, #tpu.memory_space<vmem>>, vector<1x384xf32>
    %c0_7 = arith.constant 0 : index
    %c0_8 = arith.constant 0 : index
    %4 = vector.load %arg1[%c0_7, %c0_8] : memref<16x32xf32, #tpu.memory_space<vmem>>, vector<16x32xf32>
    %cst = arith.constant dense<0.000000e+00> : vector<16x384xf32>
    %5 = tpu.matmul %4, %0, %cst {dimension_numbers = #tpu.dot_dimension_numbers<[1], [0], [0], [1], [0, 0, 1, 1], [], []>} : vector<16x32xf32>, vector<32x384xf32>, vector<16x384xf32> -> vector<16x384xf32>
    %6 = vector.broadcast %1 : vector<1x384xf32> to vector<16x384xf32>
    %7 = arith.addf %5, %6 : vector<16x384xf32>
    %c0_9 = arith.constant 0 : index
    %c0_10 = arith.constant 0 : index
    %8 = vector.load %arg2[%c0_9, %c0_10] : memref<2x128xf32, #tpu.memory_space<vmem>>, vector<2x128xf32>
    %9 = vector.extract_strided_slice %7 {offsets = [0, 0], sizes = [2, 384], strides = [1, 1]} : vector<16x384xf32> to vector<2x384xf32>
    %cst_11 = arith.constant dense<0.000000e+00> : vector<2x384xf32>
    %10 = tpu.matmul %8, %2, %cst_11 {dimension_numbers = #tpu.dot_dimension_numbers<[1], [0], [0], [1], [0, 0, 1, 1], [], []>} : vector<2x128xf32>, vector<128x384xf32>, vector<2x384xf32> -> vector<2x384xf32>
    %11 = vector.broadcast %3 : vector<1x384xf32> to vector<2x384xf32>
    %12 = arith.addf %10, %11 : vector<2x384xf32>
    %13 = vector.extract_strided_slice %9 {offsets = [0, 0], sizes = [2, 128], strides = [1, 1]} : vector<2x384xf32> to vector<2x128xf32>
    %14 = vector.extract_strided_slice %12 {offsets = [0, 0], sizes = [2, 128], strides = [1, 1]} : vector<2x384xf32> to vector<2x128xf32>
    %15 = arith.addf %13, %14 : vector<2x128xf32>
    %16 = arith.negf %15 : vector<2x128xf32>
    %17 = math.exp %16 : vector<2x128xf32>
    %cst_12 = arith.constant 1.000000e+00 : f32
    %18 = vector.broadcast %cst_12 : f32 to vector<2x128xf32>
    %19 = arith.addf %18, %17 : vector<2x128xf32>
    %20 = arith.divf %18, %19 : vector<2x128xf32>
    %21 = vector.extract_strided_slice %9 {offsets = [0, 128], sizes = [2, 128], strides = [1, 1]} : vector<2x384xf32> to vector<2x128xf32>
    %22 = vector.extract_strided_slice %12 {offsets = [0, 128], sizes = [2, 128], strides = [1, 1]} : vector<2x384xf32> to vector<2x128xf32>
    %23 = arith.addf %21, %22 : vector<2x128xf32>
    %24 = arith.negf %23 : vector<2x128xf32>
    %25 = math.exp %24 : vector<2x128xf32>
    %cst_13 = arith.constant 1.000000e+00 : f32
    %26 = vector.broadcast %cst_13 : f32 to vector<2x128xf32>
    %27 = arith.addf %26, %25 : vector<2x128xf32>
    %28 = arith.divf %26, %27 : vector<2x128xf32>
    %29 = vector.extract_strided_slice %9 {offsets = [0, 256], sizes = [2, 128], strides = [1, 1]} : vector<2x384xf32> to vector<2x128xf32>
    %30 = vector.extract_strided_slice %12 {offsets = [0, 256], sizes = [2, 128], strides = [1, 1]} : vector<2x384xf32> to vector<2x128xf32>
    %31 = arith.mulf %20, %30 : vector<2x128xf32>
    %32 = arith.addf %29, %31 : vector<2x128xf32>
    %33 = math.tanh %32 : vector<2x128xf32>
    %cst_14 = arith.constant 1.000000e+00 : f32
    %34 = vector.broadcast %cst_14 : f32 to vector<2x128xf32>
    %35 = arith.subf %34, %28 : vector<2x128xf32>
    %36 = arith.mulf %35, %33 : vector<2x128xf32>
    %37 = arith.mulf %28, %8 : vector<2x128xf32>
    %38 = arith.addf %36, %37 : vector<2x128xf32>
    %39 = vector.extract_strided_slice %7 {offsets = [2, 0], sizes = [2, 384], strides = [1, 1]} : vector<16x384xf32> to vector<2x384xf32>
    %cst_15 = arith.constant dense<0.000000e+00> : vector<2x384xf32>
    %40 = tpu.matmul %38, %2, %cst_15 {dimension_numbers = #tpu.dot_dimension_numbers<[1], [0], [0], [1], [0, 0, 1, 1], [], []>} : vector<2x128xf32>, vector<128x384xf32>, vector<2x384xf32> -> vector<2x384xf32>
    %41 = vector.broadcast %3 : vector<1x384xf32> to vector<2x384xf32>
    %42 = arith.addf %40, %41 : vector<2x384xf32>
    %43 = vector.extract_strided_slice %39 {offsets = [0, 0], sizes = [2, 128], strides = [1, 1]} : vector<2x384xf32> to vector<2x128xf32>
    %44 = vector.extract_strided_slice %42 {offsets = [0, 0], sizes = [2, 128], strides = [1, 1]} : vector<2x384xf32> to vector<2x128xf32>
    %45 = arith.addf %43, %44 : vector<2x128xf32>
    %46 = arith.negf %45 : vector<2x128xf32>
    %47 = math.exp %46 : vector<2x128xf32>
    %cst_16 = arith.constant 1.000000e+00 : f32
    %48 = vector.broadcast %cst_16 : f32 to vector<2x128xf32>
    %49 = arith.addf %48, %47 : vector<2x128xf32>
    %50 = arith.divf %48, %49 : vector<2x128xf32>
    %51 = vector.extract_strided_slice %39 {offsets = [0, 128], sizes = [2, 128], strides = [1, 1]} : vector<2x384xf32> to vector<2x128xf32>
    %52 = vector.extract_strided_slice %42 {offsets = [0, 128], sizes = [2, 128], strides = [1, 1]} : vector<2x384xf32> to vector<2x128xf32>
    %53 = arith.addf %51, %52 : vector<2x128xf32>
    %54 = arith.negf %53 : vector<2x128xf32>
    %55 = math.exp %54 : vector<2x128xf32>
    %cst_17 = arith.constant 1.000000e+00 : f32
    %56 = vector.broadcast %cst_17 : f32 to vector<2x128xf32>
    %57 = arith.addf %56, %55 : vector<2x128xf32>
    %58 = arith.divf %56, %57 : vector<2x128xf32>
    %59 = vector.extract_strided_slice %39 {offsets = [0, 256], sizes = [2, 128], strides = [1, 1]} : vector<2x384xf32> to vector<2x128xf32>
    %60 = vector.extract_strided_slice %42 {offsets = [0, 256], sizes = [2, 128], strides = [1, 1]} : vector<2x384xf32> to vector<2x128xf32>
    %61 = arith.mulf %50, %60 : vector<2x128xf32>
    %62 = arith.addf %59, %61 : vector<2x128xf32>
    %63 = math.tanh %62 : vector<2x128xf32>
    %cst_18 = arith.constant 1.000000e+00 : f32
    %64 = vector.broadcast %cst_18 : f32 to vector<2x128xf32>
    %65 = arith.subf %64, %58 : vector<2x128xf32>
    %66 = arith.mulf %65, %63 : vector<2x128xf32>
    %67 = arith.mulf %58, %38 : vector<2x128xf32>
    %68 = arith.addf %66, %67 : vector<2x128xf32>
    %69 = vector.extract_strided_slice %7 {offsets = [4, 0], sizes = [2, 384], strides = [1, 1]} : vector<16x384xf32> to vector<2x384xf32>
    %cst_19 = arith.constant dense<0.000000e+00> : vector<2x384xf32>
    %70 = tpu.matmul %68, %2, %cst_19 {dimension_numbers = #tpu.dot_dimension_numbers<[1], [0], [0], [1], [0, 0, 1, 1], [], []>} : vector<2x128xf32>, vector<128x384xf32>, vector<2x384xf32> -> vector<2x384xf32>
    %71 = vector.broadcast %3 : vector<1x384xf32> to vector<2x384xf32>
    %72 = arith.addf %70, %71 : vector<2x384xf32>
    %73 = vector.extract_strided_slice %69 {offsets = [0, 0], sizes = [2, 128], strides = [1, 1]} : vector<2x384xf32> to vector<2x128xf32>
    %74 = vector.extract_strided_slice %72 {offsets = [0, 0], sizes = [2, 128], strides = [1, 1]} : vector<2x384xf32> to vector<2x128xf32>
    %75 = arith.addf %73, %74 : vector<2x128xf32>
    %76 = arith.negf %75 : vector<2x128xf32>
    %77 = math.exp %76 : vector<2x128xf32>
    %cst_20 = arith.constant 1.000000e+00 : f32
    %78 = vector.broadcast %cst_20 : f32 to vector<2x128xf32>
    %79 = arith.addf %78, %77 : vector<2x128xf32>
    %80 = arith.divf %78, %79 : vector<2x128xf32>
    %81 = vector.extract_strided_slice %69 {offsets = [0, 128], sizes = [2, 128], strides = [1, 1]} : vector<2x384xf32> to vector<2x128xf32>
    %82 = vector.extract_strided_slice %72 {offsets = [0, 128], sizes = [2, 128], strides = [1, 1]} : vector<2x384xf32> to vector<2x128xf32>
    %83 = arith.addf %81, %82 : vector<2x128xf32>
    %84 = arith.negf %83 : vector<2x128xf32>
    %85 = math.exp %84 : vector<2x128xf32>
    %cst_21 = arith.constant 1.000000e+00 : f32
    %86 = vector.broadcast %cst_21 : f32 to vector<2x128xf32>
    %87 = arith.addf %86, %85 : vector<2x128xf32>
    %88 = arith.divf %86, %87 : vector<2x128xf32>
    %89 = vector.extract_strided_slice %69 {offsets = [0, 256], sizes = [2, 128], strides = [1, 1]} : vector<2x384xf32> to vector<2x128xf32>
    %90 = vector.extract_strided_slice %72 {offsets = [0, 256], sizes = [2, 128], strides = [1, 1]} : vector<2x384xf32> to vector<2x128xf32>
    %91 = arith.mulf %80, %90 : vector<2x128xf32>
    %92 = arith.addf %89, %91 : vector<2x128xf32>
    %93 = math.tanh %92 : vector<2x128xf32>
    %cst_22 = arith.constant 1.000000e+00 : f32
    %94 = vector.broadcast %cst_22 : f32 to vector<2x128xf32>
    %95 = arith.subf %94, %88 : vector<2x128xf32>
    %96 = arith.mulf %95, %93 : vector<2x128xf32>
    %97 = arith.mulf %88, %68 : vector<2x128xf32>
    %98 = arith.addf %96, %97 : vector<2x128xf32>
    %99 = vector.extract_strided_slice %7 {offsets = [6, 0], sizes = [2, 384], strides = [1, 1]} : vector<16x384xf32> to vector<2x384xf32>
    %cst_23 = arith.constant dense<0.000000e+00> : vector<2x384xf32>
    %100 = tpu.matmul %98, %2, %cst_23 {dimension_numbers = #tpu.dot_dimension_numbers<[1], [0], [0], [1], [0, 0, 1, 1], [], []>} : vector<2x128xf32>, vector<128x384xf32>, vector<2x384xf32> -> vector<2x384xf32>
    %101 = vector.broadcast %3 : vector<1x384xf32> to vector<2x384xf32>
    %102 = arith.addf %100, %101 : vector<2x384xf32>
    %103 = vector.extract_strided_slice %99 {offsets = [0, 0], sizes = [2, 128], strides = [1, 1]} : vector<2x384xf32> to vector<2x128xf32>
    %104 = vector.extract_strided_slice %102 {offsets = [0, 0], sizes = [2, 128], strides = [1, 1]} : vector<2x384xf32> to vector<2x128xf32>
    %105 = arith.addf %103, %104 : vector<2x128xf32>
    %106 = arith.negf %105 : vector<2x128xf32>
    %107 = math.exp %106 : vector<2x128xf32>
    %cst_24 = arith.constant 1.000000e+00 : f32
    %108 = vector.broadcast %cst_24 : f32 to vector<2x128xf32>
    %109 = arith.addf %108, %107 : vector<2x128xf32>
    %110 = arith.divf %108, %109 : vector<2x128xf32>
    %111 = vector.extract_strided_slice %99 {offsets = [0, 128], sizes = [2, 128], strides = [1, 1]} : vector<2x384xf32> to vector<2x128xf32>
    %112 = vector.extract_strided_slice %102 {offsets = [0, 128], sizes = [2, 128], strides = [1, 1]} : vector<2x384xf32> to vector<2x128xf32>
    %113 = arith.addf %111, %112 : vector<2x128xf32>
    %114 = arith.negf %113 : vector<2x128xf32>
    %115 = math.exp %114 : vector<2x128xf32>
    %cst_25 = arith.constant 1.000000e+00 : f32
    %116 = vector.broadcast %cst_25 : f32 to vector<2x128xf32>
    %117 = arith.addf %116, %115 : vector<2x128xf32>
    %118 = arith.divf %116, %117 : vector<2x128xf32>
    %119 = vector.extract_strided_slice %99 {offsets = [0, 256], sizes = [2, 128], strides = [1, 1]} : vector<2x384xf32> to vector<2x128xf32>
    %120 = vector.extract_strided_slice %102 {offsets = [0, 256], sizes = [2, 128], strides = [1, 1]} : vector<2x384xf32> to vector<2x128xf32>
    %121 = arith.mulf %110, %120 : vector<2x128xf32>
    %122 = arith.addf %119, %121 : vector<2x128xf32>
    %123 = math.tanh %122 : vector<2x128xf32>
    %cst_26 = arith.constant 1.000000e+00 : f32
    %124 = vector.broadcast %cst_26 : f32 to vector<2x128xf32>
    %125 = arith.subf %124, %118 : vector<2x128xf32>
    %126 = arith.mulf %125, %123 : vector<2x128xf32>
    %127 = arith.mulf %118, %98 : vector<2x128xf32>
    %128 = arith.addf %126, %127 : vector<2x128xf32>
    %129 = vector.extract_strided_slice %7 {offsets = [8, 0], sizes = [2, 384], strides = [1, 1]} : vector<16x384xf32> to vector<2x384xf32>
    %cst_27 = arith.constant dense<0.000000e+00> : vector<2x384xf32>
    %130 = tpu.matmul %128, %2, %cst_27 {dimension_numbers = #tpu.dot_dimension_numbers<[1], [0], [0], [1], [0, 0, 1, 1], [], []>} : vector<2x128xf32>, vector<128x384xf32>, vector<2x384xf32> -> vector<2x384xf32>
    %131 = vector.broadcast %3 : vector<1x384xf32> to vector<2x384xf32>
    %132 = arith.addf %130, %131 : vector<2x384xf32>
    %133 = vector.extract_strided_slice %129 {offsets = [0, 0], sizes = [2, 128], strides = [1, 1]} : vector<2x384xf32> to vector<2x128xf32>
    %134 = vector.extract_strided_slice %132 {offsets = [0, 0], sizes = [2, 128], strides = [1, 1]} : vector<2x384xf32> to vector<2x128xf32>
    %135 = arith.addf %133, %134 : vector<2x128xf32>
    %136 = arith.negf %135 : vector<2x128xf32>
    %137 = math.exp %136 : vector<2x128xf32>
    %cst_28 = arith.constant 1.000000e+00 : f32
    %138 = vector.broadcast %cst_28 : f32 to vector<2x128xf32>
    %139 = arith.addf %138, %137 : vector<2x128xf32>
    %140 = arith.divf %138, %139 : vector<2x128xf32>
    %141 = vector.extract_strided_slice %129 {offsets = [0, 128], sizes = [2, 128], strides = [1, 1]} : vector<2x384xf32> to vector<2x128xf32>
    %142 = vector.extract_strided_slice %132 {offsets = [0, 128], sizes = [2, 128], strides = [1, 1]} : vector<2x384xf32> to vector<2x128xf32>
    %143 = arith.addf %141, %142 : vector<2x128xf32>
    %144 = arith.negf %143 : vector<2x128xf32>
    %145 = math.exp %144 : vector<2x128xf32>
    %cst_29 = arith.constant 1.000000e+00 : f32
    %146 = vector.broadcast %cst_29 : f32 to vector<2x128xf32>
    %147 = arith.addf %146, %145 : vector<2x128xf32>
    %148 = arith.divf %146, %147 : vector<2x128xf32>
    %149 = vector.extract_strided_slice %129 {offsets = [0, 256], sizes = [2, 128], strides = [1, 1]} : vector<2x384xf32> to vector<2x128xf32>
    %150 = vector.extract_strided_slice %132 {offsets = [0, 256], sizes = [2, 128], strides = [1, 1]} : vector<2x384xf32> to vector<2x128xf32>
    %151 = arith.mulf %140, %150 : vector<2x128xf32>
    %152 = arith.addf %149, %151 : vector<2x128xf32>
    %153 = math.tanh %152 : vector<2x128xf32>
    %cst_30 = arith.constant 1.000000e+00 : f32
    %154 = vector.broadcast %cst_30 : f32 to vector<2x128xf32>
    %155 = arith.subf %154, %148 : vector<2x128xf32>
    %156 = arith.mulf %155, %153 : vector<2x128xf32>
    %157 = arith.mulf %148, %128 : vector<2x128xf32>
    %158 = arith.addf %156, %157 : vector<2x128xf32>
    %159 = vector.extract_strided_slice %7 {offsets = [10, 0], sizes = [2, 384], strides = [1, 1]} : vector<16x384xf32> to vector<2x384xf32>
    %cst_31 = arith.constant dense<0.000000e+00> : vector<2x384xf32>
    %160 = tpu.matmul %158, %2, %cst_31 {dimension_numbers = #tpu.dot_dimension_numbers<[1], [0], [0], [1], [0, 0, 1, 1], [], []>} : vector<2x128xf32>, vector<128x384xf32>, vector<2x384xf32> -> vector<2x384xf32>
    %161 = vector.broadcast %3 : vector<1x384xf32> to vector<2x384xf32>
    %162 = arith.addf %160, %161 : vector<2x384xf32>
    %163 = vector.extract_strided_slice %159 {offsets = [0, 0], sizes = [2, 128], strides = [1, 1]} : vector<2x384xf32> to vector<2x128xf32>
    %164 = vector.extract_strided_slice %162 {offsets = [0, 0], sizes = [2, 128], strides = [1, 1]} : vector<2x384xf32> to vector<2x128xf32>
    %165 = arith.addf %163, %164 : vector<2x128xf32>
    %166 = arith.negf %165 : vector<2x128xf32>
    %167 = math.exp %166 : vector<2x128xf32>
    %cst_32 = arith.constant 1.000000e+00 : f32
    %168 = vector.broadcast %cst_32 : f32 to vector<2x128xf32>
    %169 = arith.addf %168, %167 : vector<2x128xf32>
    %170 = arith.divf %168, %169 : vector<2x128xf32>
    %171 = vector.extract_strided_slice %159 {offsets = [0, 128], sizes = [2, 128], strides = [1, 1]} : vector<2x384xf32> to vector<2x128xf32>
    %172 = vector.extract_strided_slice %162 {offsets = [0, 128], sizes = [2, 128], strides = [1, 1]} : vector<2x384xf32> to vector<2x128xf32>
    %173 = arith.addf %171, %172 : vector<2x128xf32>
    %174 = arith.negf %173 : vector<2x128xf32>
    %175 = math.exp %174 : vector<2x128xf32>
    %cst_33 = arith.constant 1.000000e+00 : f32
    %176 = vector.broadcast %cst_33 : f32 to vector<2x128xf32>
    %177 = arith.addf %176, %175 : vector<2x128xf32>
    %178 = arith.divf %176, %177 : vector<2x128xf32>
    %179 = vector.extract_strided_slice %159 {offsets = [0, 256], sizes = [2, 128], strides = [1, 1]} : vector<2x384xf32> to vector<2x128xf32>
    %180 = vector.extract_strided_slice %162 {offsets = [0, 256], sizes = [2, 128], strides = [1, 1]} : vector<2x384xf32> to vector<2x128xf32>
    %181 = arith.mulf %170, %180 : vector<2x128xf32>
    %182 = arith.addf %179, %181 : vector<2x128xf32>
    %183 = math.tanh %182 : vector<2x128xf32>
    %cst_34 = arith.constant 1.000000e+00 : f32
    %184 = vector.broadcast %cst_34 : f32 to vector<2x128xf32>
    %185 = arith.subf %184, %178 : vector<2x128xf32>
    %186 = arith.mulf %185, %183 : vector<2x128xf32>
    %187 = arith.mulf %178, %158 : vector<2x128xf32>
    %188 = arith.addf %186, %187 : vector<2x128xf32>
    %189 = vector.extract_strided_slice %7 {offsets = [12, 0], sizes = [2, 384], strides = [1, 1]} : vector<16x384xf32> to vector<2x384xf32>
    %cst_35 = arith.constant dense<0.000000e+00> : vector<2x384xf32>
    %190 = tpu.matmul %188, %2, %cst_35 {dimension_numbers = #tpu.dot_dimension_numbers<[1], [0], [0], [1], [0, 0, 1, 1], [], []>} : vector<2x128xf32>, vector<128x384xf32>, vector<2x384xf32> -> vector<2x384xf32>
    %191 = vector.broadcast %3 : vector<1x384xf32> to vector<2x384xf32>
    %192 = arith.addf %190, %191 : vector<2x384xf32>
    %193 = vector.extract_strided_slice %189 {offsets = [0, 0], sizes = [2, 128], strides = [1, 1]} : vector<2x384xf32> to vector<2x128xf32>
    %194 = vector.extract_strided_slice %192 {offsets = [0, 0], sizes = [2, 128], strides = [1, 1]} : vector<2x384xf32> to vector<2x128xf32>
    %195 = arith.addf %193, %194 : vector<2x128xf32>
    %196 = arith.negf %195 : vector<2x128xf32>
    %197 = math.exp %196 : vector<2x128xf32>
    %cst_36 = arith.constant 1.000000e+00 : f32
    %198 = vector.broadcast %cst_36 : f32 to vector<2x128xf32>
    %199 = arith.addf %198, %197 : vector<2x128xf32>
    %200 = arith.divf %198, %199 : vector<2x128xf32>
    %201 = vector.extract_strided_slice %189 {offsets = [0, 128], sizes = [2, 128], strides = [1, 1]} : vector<2x384xf32> to vector<2x128xf32>
    %202 = vector.extract_strided_slice %192 {offsets = [0, 128], sizes = [2, 128], strides = [1, 1]} : vector<2x384xf32> to vector<2x128xf32>
    %203 = arith.addf %201, %202 : vector<2x128xf32>
    %204 = arith.negf %203 : vector<2x128xf32>
    %205 = math.exp %204 : vector<2x128xf32>
    %cst_37 = arith.constant 1.000000e+00 : f32
    %206 = vector.broadcast %cst_37 : f32 to vector<2x128xf32>
    %207 = arith.addf %206, %205 : vector<2x128xf32>
    %208 = arith.divf %206, %207 : vector<2x128xf32>
    %209 = vector.extract_strided_slice %189 {offsets = [0, 256], sizes = [2, 128], strides = [1, 1]} : vector<2x384xf32> to vector<2x128xf32>
    %210 = vector.extract_strided_slice %192 {offsets = [0, 256], sizes = [2, 128], strides = [1, 1]} : vector<2x384xf32> to vector<2x128xf32>
    %211 = arith.mulf %200, %210 : vector<2x128xf32>
    %212 = arith.addf %209, %211 : vector<2x128xf32>
    %213 = math.tanh %212 : vector<2x128xf32>
    %cst_38 = arith.constant 1.000000e+00 : f32
    %214 = vector.broadcast %cst_38 : f32 to vector<2x128xf32>
    %215 = arith.subf %214, %208 : vector<2x128xf32>
    %216 = arith.mulf %215, %213 : vector<2x128xf32>
    %217 = arith.mulf %208, %188 : vector<2x128xf32>
    %218 = arith.addf %216, %217 : vector<2x128xf32>
    %219 = vector.extract_strided_slice %7 {offsets = [14, 0], sizes = [2, 384], strides = [1, 1]} : vector<16x384xf32> to vector<2x384xf32>
    %cst_39 = arith.constant dense<0.000000e+00> : vector<2x384xf32>
    %220 = tpu.matmul %218, %2, %cst_39 {dimension_numbers = #tpu.dot_dimension_numbers<[1], [0], [0], [1], [0, 0, 1, 1], [], []>} : vector<2x128xf32>, vector<128x384xf32>, vector<2x384xf32> -> vector<2x384xf32>
    %221 = vector.broadcast %3 : vector<1x384xf32> to vector<2x384xf32>
    %222 = arith.addf %220, %221 : vector<2x384xf32>
    %223 = vector.extract_strided_slice %219 {offsets = [0, 0], sizes = [2, 128], strides = [1, 1]} : vector<2x384xf32> to vector<2x128xf32>
    %224 = vector.extract_strided_slice %222 {offsets = [0, 0], sizes = [2, 128], strides = [1, 1]} : vector<2x384xf32> to vector<2x128xf32>
    %225 = arith.addf %223, %224 : vector<2x128xf32>
    %226 = arith.negf %225 : vector<2x128xf32>
    %227 = math.exp %226 : vector<2x128xf32>
    %cst_40 = arith.constant 1.000000e+00 : f32
    %228 = vector.broadcast %cst_40 : f32 to vector<2x128xf32>
    %229 = arith.addf %228, %227 : vector<2x128xf32>
    %230 = arith.divf %228, %229 : vector<2x128xf32>
    %231 = vector.extract_strided_slice %219 {offsets = [0, 128], sizes = [2, 128], strides = [1, 1]} : vector<2x384xf32> to vector<2x128xf32>
    %232 = vector.extract_strided_slice %222 {offsets = [0, 128], sizes = [2, 128], strides = [1, 1]} : vector<2x384xf32> to vector<2x128xf32>
    %233 = arith.addf %231, %232 : vector<2x128xf32>
    %234 = arith.negf %233 : vector<2x128xf32>
    %235 = math.exp %234 : vector<2x128xf32>
    %cst_41 = arith.constant 1.000000e+00 : f32
    %236 = vector.broadcast %cst_41 : f32 to vector<2x128xf32>
    %237 = arith.addf %236, %235 : vector<2x128xf32>
    %238 = arith.divf %236, %237 : vector<2x128xf32>
    %239 = vector.extract_strided_slice %219 {offsets = [0, 256], sizes = [2, 128], strides = [1, 1]} : vector<2x384xf32> to vector<2x128xf32>
    %240 = vector.extract_strided_slice %222 {offsets = [0, 256], sizes = [2, 128], strides = [1, 1]} : vector<2x384xf32> to vector<2x128xf32>
    %241 = arith.mulf %230, %240 : vector<2x128xf32>
    %242 = arith.addf %239, %241 : vector<2x128xf32>
    %243 = math.tanh %242 : vector<2x128xf32>
    %cst_42 = arith.constant 1.000000e+00 : f32
    %244 = vector.broadcast %cst_42 : f32 to vector<2x128xf32>
    %245 = arith.subf %244, %238 : vector<2x128xf32>
    %246 = arith.mulf %245, %243 : vector<2x128xf32>
    %247 = arith.mulf %238, %218 : vector<2x128xf32>
    %248 = arith.addf %246, %247 : vector<2x128xf32>
    %249 = vector.extract_strided_slice %38 {offsets = [0, 0], sizes = [2, 32], strides = [1, 1]} : vector<2x128xf32> to vector<2x32xf32>
    %250 = vector.extract_strided_slice %68 {offsets = [0, 0], sizes = [2, 32], strides = [1, 1]} : vector<2x128xf32> to vector<2x32xf32>
    %251 = vector.extract_strided_slice %98 {offsets = [0, 0], sizes = [2, 32], strides = [1, 1]} : vector<2x128xf32> to vector<2x32xf32>
    %252 = vector.extract_strided_slice %128 {offsets = [0, 0], sizes = [2, 32], strides = [1, 1]} : vector<2x128xf32> to vector<2x32xf32>
    %253 = vector.extract_strided_slice %158 {offsets = [0, 0], sizes = [2, 32], strides = [1, 1]} : vector<2x128xf32> to vector<2x32xf32>
    %254 = vector.extract_strided_slice %188 {offsets = [0, 0], sizes = [2, 32], strides = [1, 1]} : vector<2x128xf32> to vector<2x32xf32>
    %255 = vector.extract_strided_slice %218 {offsets = [0, 0], sizes = [2, 32], strides = [1, 1]} : vector<2x128xf32> to vector<2x32xf32>
    %256 = vector.extract_strided_slice %248 {offsets = [0, 0], sizes = [2, 32], strides = [1, 1]} : vector<2x128xf32> to vector<2x32xf32>
    %257 = tpu.concatenate %249, %250, %251, %252, %253, %254, %255, %256 in 0 : vector<2x32xf32>, vector<2x32xf32>, vector<2x32xf32>, vector<2x32xf32>, vector<2x32xf32>, vector<2x32xf32>, vector<2x32xf32>, vector<2x32xf32> -> vector<16x32xf32>
    %258 = vector.extract_strided_slice %248 {offsets = [0, 32], sizes = [2, 32], strides = [1, 1]} : vector<2x128xf32> to vector<2x32xf32>
    %259 = vector.extract_strided_slice %218 {offsets = [0, 32], sizes = [2, 32], strides = [1, 1]} : vector<2x128xf32> to vector<2x32xf32>
    %260 = vector.extract_strided_slice %188 {offsets = [0, 32], sizes = [2, 32], strides = [1, 1]} : vector<2x128xf32> to vector<2x32xf32>
    %261 = vector.extract_strided_slice %158 {offsets = [0, 32], sizes = [2, 32], strides = [1, 1]} : vector<2x128xf32> to vector<2x32xf32>
    %262 = vector.extract_strided_slice %128 {offsets = [0, 32], sizes = [2, 32], strides = [1, 1]} : vector<2x128xf32> to vector<2x32xf32>
    %263 = vector.extract_strided_slice %98 {offsets = [0, 32], sizes = [2, 32], strides = [1, 1]} : vector<2x128xf32> to vector<2x32xf32>
    %264 = vector.extract_strided_slice %68 {offsets = [0, 32], sizes = [2, 32], strides = [1, 1]} : vector<2x128xf32> to vector<2x32xf32>
    %265 = vector.extract_strided_slice %38 {offsets = [0, 32], sizes = [2, 32], strides = [1, 1]} : vector<2x128xf32> to vector<2x32xf32>
    %266 = tpu.concatenate %258, %259, %260, %261, %262, %263, %264, %265 in 0 : vector<2x32xf32>, vector<2x32xf32>, vector<2x32xf32>, vector<2x32xf32>, vector<2x32xf32>, vector<2x32xf32>, vector<2x32xf32>, vector<2x32xf32> -> vector<16x32xf32>
    %267 = tpu.concatenate %257, %266 in 1 : vector<16x32xf32>, vector<16x32xf32> -> vector<16x64xf32>
    %c0_43 = arith.constant 0 : index
    %c0_44 = arith.constant 0 : index
    %268 = vector.load %arg7[%c0_43, %c0_44] : memref<64x64xf32, #tpu.memory_space<vmem>>, vector<64x64xf32>
    %cst_45 = arith.constant dense<0.000000e+00> : vector<16x64xf32>
    %269 = tpu.matmul %267, %268, %cst_45 {dimension_numbers = #tpu.dot_dimension_numbers<[1], [0], [0], [1], [0, 0, 1, 1], [], []>} : vector<16x64xf32>, vector<64x64xf32>, vector<16x64xf32> -> vector<16x64xf32>
    %c0_46 = arith.constant 0 : index
    %c0_47 = arith.constant 0 : index
    %270 = vector.load %arg8[%c0_46, %c0_47] : memref<1x64xf32, #tpu.memory_space<vmem>>, vector<1x64xf32>
    %271 = vector.broadcast %270 : vector<1x64xf32> to vector<16x64xf32>
    %272 = arith.addf %269, %271 : vector<16x64xf32>
    %273 = math.tanh %272 : vector<16x64xf32>
    %c0_48 = arith.constant 0 : index
    %c0_49 = arith.constant 0 : index
    %274 = vector.load %arg9[%c0_48, %c0_49] : memref<1x64xf32, #tpu.memory_space<vmem>>, vector<1x64xf32>
    %275 = vector.broadcast %274 : vector<1x64xf32> to vector<16x64xf32>
    %276 = arith.mulf %273, %275 : vector<16x64xf32>
    %cst_50 = arith.constant dense<0.000000e+00> : vector<16xf32>
    %277 = vector.multi_reduction <add>, %276, %cst_50 [1] : vector<16x64xf32> to vector<16xf32>
    %278 = vector.shape_cast %277 : vector<16xf32> to vector<16x1xf32>
    %279 = math.tanh %278 : vector<16x1xf32>
    %280 = math.exp %279 : vector<16x1xf32>
    %cst_51 = arith.constant 0.000000e+00 : f32
    %281 = vector.broadcast %cst_51 : f32 to vector<2x64xf32>
    %cst_52 = arith.constant 0.000000e+00 : f32
    %282 = vector.broadcast %cst_52 : f32 to vector<2x1xf32>
    %283 = vector.extract_strided_slice %280 {offsets = [0, 0], sizes = [2, 1], strides = [1, 1]} : vector<16x1xf32> to vector<2x1xf32>
    %284 = vector.extract_strided_slice %267 {offsets = [0, 0], sizes = [2, 64], strides = [1, 1]} : vector<16x64xf32> to vector<2x64xf32>
    %285 = vector.broadcast %283 : vector<2x1xf32> to vector<2x64xf32>
    %286 = arith.mulf %284, %285 : vector<2x64xf32>
    %287 = arith.addf %281, %286 : vector<2x64xf32>
    %288 = arith.addf %282, %283 : vector<2x1xf32>
    %289 = vector.extract_strided_slice %280 {offsets = [2, 0], sizes = [2, 1], strides = [1, 1]} : vector<16x1xf32> to vector<2x1xf32>
    %290 = vector.extract_strided_slice %267 {offsets = [2, 0], sizes = [2, 64], strides = [1, 1]} : vector<16x64xf32> to vector<2x64xf32>
    %291 = vector.broadcast %289 : vector<2x1xf32> to vector<2x64xf32>
    %292 = arith.mulf %290, %291 : vector<2x64xf32>
    %293 = arith.addf %287, %292 : vector<2x64xf32>
    %294 = arith.addf %288, %289 : vector<2x1xf32>
    %295 = vector.extract_strided_slice %280 {offsets = [4, 0], sizes = [2, 1], strides = [1, 1]} : vector<16x1xf32> to vector<2x1xf32>
    %296 = vector.extract_strided_slice %267 {offsets = [4, 0], sizes = [2, 64], strides = [1, 1]} : vector<16x64xf32> to vector<2x64xf32>
    %297 = vector.broadcast %295 : vector<2x1xf32> to vector<2x64xf32>
    %298 = arith.mulf %296, %297 : vector<2x64xf32>
    %299 = arith.addf %293, %298 : vector<2x64xf32>
    %300 = arith.addf %294, %295 : vector<2x1xf32>
    %301 = vector.extract_strided_slice %280 {offsets = [6, 0], sizes = [2, 1], strides = [1, 1]} : vector<16x1xf32> to vector<2x1xf32>
    %302 = vector.extract_strided_slice %267 {offsets = [6, 0], sizes = [2, 64], strides = [1, 1]} : vector<16x64xf32> to vector<2x64xf32>
    %303 = vector.broadcast %301 : vector<2x1xf32> to vector<2x64xf32>
    %304 = arith.mulf %302, %303 : vector<2x64xf32>
    %305 = arith.addf %299, %304 : vector<2x64xf32>
    %306 = arith.addf %300, %301 : vector<2x1xf32>
    %307 = vector.extract_strided_slice %280 {offsets = [8, 0], sizes = [2, 1], strides = [1, 1]} : vector<16x1xf32> to vector<2x1xf32>
    %308 = vector.extract_strided_slice %267 {offsets = [8, 0], sizes = [2, 64], strides = [1, 1]} : vector<16x64xf32> to vector<2x64xf32>
    %309 = vector.broadcast %307 : vector<2x1xf32> to vector<2x64xf32>
    %310 = arith.mulf %308, %309 : vector<2x64xf32>
    %311 = arith.addf %305, %310 : vector<2x64xf32>
    %312 = arith.addf %306, %307 : vector<2x1xf32>
    %313 = vector.extract_strided_slice %280 {offsets = [10, 0], sizes = [2, 1], strides = [1, 1]} : vector<16x1xf32> to vector<2x1xf32>
    %314 = vector.extract_strided_slice %267 {offsets = [10, 0], sizes = [2, 64], strides = [1, 1]} : vector<16x64xf32> to vector<2x64xf32>
    %315 = vector.broadcast %313 : vector<2x1xf32> to vector<2x64xf32>
    %316 = arith.mulf %314, %315 : vector<2x64xf32>
    %317 = arith.addf %311, %316 : vector<2x64xf32>
    %318 = arith.addf %312, %313 : vector<2x1xf32>
    %319 = vector.extract_strided_slice %280 {offsets = [12, 0], sizes = [2, 1], strides = [1, 1]} : vector<16x1xf32> to vector<2x1xf32>
    %320 = vector.extract_strided_slice %267 {offsets = [12, 0], sizes = [2, 64], strides = [1, 1]} : vector<16x64xf32> to vector<2x64xf32>
    %321 = vector.broadcast %319 : vector<2x1xf32> to vector<2x64xf32>
    %322 = arith.mulf %320, %321 : vector<2x64xf32>
    %323 = arith.addf %317, %322 : vector<2x64xf32>
    %324 = arith.addf %318, %319 : vector<2x1xf32>
    %325 = vector.extract_strided_slice %280 {offsets = [14, 0], sizes = [2, 1], strides = [1, 1]} : vector<16x1xf32> to vector<2x1xf32>
    %326 = vector.extract_strided_slice %267 {offsets = [14, 0], sizes = [2, 64], strides = [1, 1]} : vector<16x64xf32> to vector<2x64xf32>
    %327 = vector.broadcast %325 : vector<2x1xf32> to vector<2x64xf32>
    %328 = arith.mulf %326, %327 : vector<2x64xf32>
    %329 = arith.addf %323, %328 : vector<2x64xf32>
    %330 = arith.addf %324, %325 : vector<2x1xf32>
    %331 = tpu.reciprocal %330 {approx = true} : vector<2x1xf32> -> vector<2x1xf32>
    %332 = vector.broadcast %331 : vector<2x1xf32> to vector<2x64xf32>
    %333 = arith.mulf %329, %332 : vector<2x64xf32>
    %334 = vector.extract_strided_slice %248 {offsets = [0, 0], sizes = [2, 64], strides = [1, 1]} : vector<2x128xf32> to vector<2x64xf32>
    %335 = tpu.concatenate %333, %334 in 1 : vector<2x64xf32>, vector<2x64xf32> -> vector<2x128xf32>
    %c0_53 = arith.constant 0 : index
    %c0_54 = arith.constant 0 : index
    %336 = vector.load %arg10[%c0_53, %c0_54] : memref<2x128xf32, #tpu.memory_space<vmem>>, vector<2x128xf32>
    tpu.vector_store %arg10[%c0_53, %c0_54], %335 {strides = array<i32>} : memref<2x128xf32, #tpu.memory_space<vmem>>, vector<2x128xf32>,
    return
  }
  func.func @transform_0(%arg0: i32) -> (i32, i32) {
    %c0_i32 = arith.constant 0 : i32
    %c0_i32_0 = arith.constant 0 : i32
    return %arg0, %c0_i32 : i32, i32
  }
  func.func @transform_1(%arg0: i32) -> (i32, i32) {
    %c0_i32 = arith.constant 0 : i32
    %c0_i32_0 = arith.constant 0 : i32
    return %arg0, %c0_i32 : i32, i32
  }
  func.func @transform_2(%arg0: i32) -> (i32, i32) {
    %c0_i32 = arith.constant 0 : i32
    %c0_i32_0 = arith.constant 0 : i32
    %c0_i32_1 = arith.constant 0 : i32
    return %c0_i32, %c0_i32_0 : i32, i32
  }
  func.func @transform_3(%arg0: i32) -> (i32, i32) {
    %c0_i32 = arith.constant 0 : i32
    %c0_i32_0 = arith.constant 0 : i32
    %c0_i32_1 = arith.constant 0 : i32
    return %c0_i32, %c0_i32_0 : i32, i32
  }
  func.func @transform_4(%arg0: i32) -> (i32, i32) {
    %c0_i32 = arith.constant 0 : i32
    %c0_i32_0 = arith.constant 0 : i32
    %c0_i32_1 = arith.constant 0 : i32
    return %c0_i32, %c0_i32_0 : i32, i32
  }
  func.func @transform_5(%arg0: i32) -> (i32, i32) {
    %c0_i32 = arith.constant 0 : i32
    %c0_i32_0 = arith.constant 0 : i32
    %c0_i32_1 = arith.constant 0 : i32
    return %c0_i32, %c0_i32_0 : i32, i32
  }
  func.func @transform_6(%arg0: i32) -> (i32, i32) {
    %c0_i32 = arith.constant 0 : i32
    %c0_i32_0 = arith.constant 0 : i32
    %c0_i32_1 = arith.constant 0 : i32
    return %c0_i32, %c0_i32_0 : i32, i32
  }
  func.func @transform_7(%arg0: i32) -> (i32, i32) {
    %c0_i32 = arith.constant 0 : i32
    %c0_i32_0 = arith.constant 0 : i32
    %c0_i32_1 = arith.constant 0 : i32
    return %c0_i32, %c0_i32_0 : i32, i32
  }
  func.func @transform_8(%arg0: i32) -> (i32, i32) {
    %c0_i32 = arith.constant 0 : i32
    %c0_i32_0 = arith.constant 0 : i32
    %c0_i32_1 = arith.constant 0 : i32
    return %c0_i32, %c0_i32_0 : i32, i32
  }
  func.func @transform_9(%arg0: i32) -> (i32, i32) {
    %c0_i32 = arith.constant 0 : i32
    %c0_i32_0 = arith.constant 0 : i32
    return %arg0, %c0_i32 : i32, i32
  }
}

</mosaic_0001>

<bundles_post_ra>
// kernel: word_att_encoder.1
= control target key start
LH: loop header
LB: loop body
LE: loop exit
PB: predicated region body
PF: predicated region fallthrough
CT: control target
= control target key end

     0   :  { %14 = vsyncpa [#allocation3], 0  ;;  %s1496_s12 = smov [#allocation2]   ;;  %s1497_s14 = smov 384   ;;  %s2388_s0 = inlined_call_operand.vmem [shape: f32[16,32], index: 0, kind: input, shape index: {}]   ;;  %s2389_s1 = inlined_call_operand.vmem [shape: f32[2,128], index: 1, kind: input, shape index: {}]   ;;  %s2390_s2 = inlined_call_operand.vmem [shape: f32[32,384], index: 2, kind: input, shape index: {}]   ;;  %s2391_s3 = inlined_call_operand.vmem [shape: f32[1,384], index: 3, kind: input, shape index: {}]   ;;  %s2392_s4 = inlined_call_operand.hbm [shape: f32[128,384], index: 4, kind: input, shape index: {}]   ;;  %s2393_s5 = inlined_call_operand.vmem [shape: f32[1,384], index: 5, kind: input, shape index: {}]   ;;  %s2394_s6 = inlined_call_operand.vmem [shape: f32[64,64], index: 6, kind: input, shape index: {}]   ;;  %s2395_s7 = inlined_call_operand.vmem [shape: f32[1,64], index: 7, kind: input, shape index: {}]   ;;  %s2396_s8 = inlined_call_operand.vmem [shape: f32[1,64], index: 8, kind: input, shape index: {}]   ;;  %s2397_s9 = inlined_call_operand.vmem [shape: f32[2,128], index: 9, kind: output, shape index: {}]  }
   0x1   :  { %s27_s11 = sshll.u32 %s2392_s4, 4  ;;  %s29_s13 = sshll.u32 %s1496_s12, 4  ;;  %s28_s11 = int_to_ptr.hbm [resolvable:$true] %s27_s11  ;;  %s30_s13 = int_to_ptr.vmem [resolvable:$true] %s29_s13 }
   0x2   :  { %s1498_s15 = smov 24  }
   0x3   :  { %35 = dma.hbm_to_vmem [thread:$0]  %s28_s11, 6144, %s30_s13, [#allocation3], %s1497_s14, %s1497_s14, %s1498_s15  }
   0x4   :  { %1494 = dma.done.wait [#allocation3], 6144  }
   0x5   :  { %1495 = vsyncadd [#allocation3], 4294961152  ;;  %v57_v0 = vld [vmem:[%s2390_s2 + $0x48] sm:$0xff]  ;;  %v54_v2 = vld [vmem:[%s2390_s2 + $0x30] sm:$0xff]  ;;  %vm119_vm0 = vcmask 261120  }
   0x6   :  { %v1557_v1 = vld [vmem:[#allocation2 + $0x168] sm:$0xff]  ;;  %138 = vmatpush.msra.mxu0 %v57_v0  ;;  %v1563_v3 = vld [vmem:[#allocation2 + $0x150] sm:$0xff]  ;;  %v51_v4 = vld [vmem:[%s2390_s2 + $0x18] sm:$0xff] }
   0x7   :  { %203 = vmatpush.msra.mxu3 %v1557_v1  ;;  %v1568_v5 = vld [vmem:[#allocation2 + $0x138] sm:$0xff]  ;;  %v48_v6 = vld [vmem:[%s2390_s2] sm:$0xff]  ;;  %v1577_v8 = vld [vmem:[#allocation2 + $0x170] sm:$0xff] }
   0x8   :  { %139 = vmatpush.msra.mxu0 %v54_v2  ;;  %v1574_v7 = vld [vmem:[#allocation2 + $0x120] sm:$0xff]  ;;  %v1579_v9 = vld [vmem:[#allocation2 + $0x108] sm:$0xff]  ;;  %v1582_v10 = vld [vmem:[#allocation2 + $0x158] sm:$0xff] }
   0x9   :  { %204 = vmatpush.msra.mxu3 %v1563_v3  ;;  %v1587_v11 = vld [vmem:[%s2388_s0] sm:$0xff]  ;;  %v1590_v12 = vld [vmem:[#allocation2 + $0xf0] sm:$0xff]  ;;  %v1598_v14 = vld [vmem:[#allocation2 + $0xd8] sm:$0xff] }
   0xa   :  { %140 = vmatpush.msra.mxu0 %v51_v4  ;;  %v1593_v13 = vld [vmem:[#allocation2 + $0x140] sm:$0xff]  ;;  %v58_v15 = vld [vmem:[%s2390_s2 + $0x50] sm:$0xff]  ;;  %v1604_v16 = vld [vmem:[#allocation2 + $0x128] sm:$0xff] }
   0xb   :  { %205 = vmatpush.msra.mxu3 %v1568_v5  ;;  %161 = vmatpush.msra.mxu1 %v58_v15  ;;  %v55_v17 = vld [vmem:[%s2390_s2 + $0x38] sm:$0xff]  ;;  %v1610_v18 = vld [vmem:[#allocation2 + $0xc0] sm:$0xff]  ;;  %v1616_v20 = vld [vmem:[#allocation2 + $0x110] sm:$0xff] }
   0xc   :  { %141 = vmatpush.msra.mxu0 %v48_v6  ;;  %v52_v19 = vld [vmem:[%s2390_s2 + $0x20] sm:$0xff]  ;;  %v1619_v21 = vld [vmem:[#allocation2 + $0xa8] sm:$0xff]  ;;  %v1627_v23 = vld [vmem:[#allocation2 + $0xf8] sm:$0xff] }
   0xd   :  { %206 = vmatpush.msra.mxu3 %v1574_v7  ;;  %1295 = vmatmul.msk.f32.vlgmr.msra.gmra.mxu0 %vm119_vm0, %v1587_v11  ;;  %v1624_v22 = vld [vmem:[%s2388_s0 + $0x8] sm:$0xff]  ;;  %v1633_v25 = vld [vmem:[#allocation2 + $0x90] sm:$0xff]  ;;  %v1635_v26 = vld [vmem:[#allocation2 + $0x178] sm:$0xff] }
   0xe   :  { %223 = vmatpush.msrb.mxu0 %v1577_v8  ;;  %162 = vmatpush.msra.mxu1 %v55_v17  ;;  %v49_v24 = vld [vmem:[%s2390_s2 + $0x8] sm:$0xff]  ;;  %v1638_v27 = vld [vmem:[#allocation2 + $0xe0] sm:$0xff]  ;;  %v1643_v28 = vld [vmem:[#allocation2 + $0x78] sm:$0xff] }
   0xf   :  { %207 = vmatpush.msra.mxu3 %v1579_v9  ;;  %v1645_v29 = vld [vmem:[#allocation2 + $0x160] sm:$0xff]  ;;  %v1648_v30 = vld [vmem:[#allocation2 + $0xc8] sm:$0xff]  ;;  %v59_v31 = vld [vmem:[%s2390_s2 + $0x58] sm:$0xff] }
  0x10   :  { %224 = vmatpush.msrb.mxu0 %v1582_v10  ;;  %163 = vmatpush.msra.mxu1 %v52_v19  ;;  %v1655_v32 = vld [vmem:[#allocation2 + $0x60] sm:$0xff]  ;;  %v1657_v33 = vld [vmem:[#allocation2 + $0xb0] sm:$0xff]  ;;  %v1661_v34 = vld [vmem:[#allocation2 + $0x148] sm:$0xff] }
  0x11   :  { %208 = vmatpush.msra.mxu3 %v1590_v12  ;;  %v56_v35 = vld [vmem:[%s2390_s2 + $0x40] sm:$0xff]  ;;  %v1669_v36 = vld [vmem:[#allocation2 + $0x48] sm:$0xff]  ;;  %v1671_v37 = vld [vmem:[#allocation2 + $0x130] sm:$0xff]  ;;  %184 = vmatpush.msra.mxu2 %v59_v31 }
  0x12   :  { %225 = vmatpush.msrb.mxu0 %v1593_v13  ;;  %164 = vmatpush.msra.mxu1 %v49_v24  ;;  %v1674_v38 = vld [vmem:[#allocation2 + $0x98] sm:$0xff]  ;;  %v53_v39 = vld [vmem:[%s2390_s2 + $0x28] sm:$0xff]  ;;  %v1681_v40 = vld [vmem:[#allocation2 + $0x30] sm:$0xff] }
  0x13   :  { %209 = vmatpush.msra.mxu3 %v1598_v14  ;;  %1297 = vmatmul.msk.f32.vlgmr.msra.gmra.mxu1 %vm119_vm0, %v1587_v11  ;;  %2428 = vst [vmem:[#allocation5_spill] sm:$0xff] %v1681_v40  ;;  %v1683_v41 = vld [vmem:[#allocation2 + $0x118] sm:$0xff]  ;;  %v1686_v42 = vld [vmem:[#allocation2 + $0x80] sm:$0xff]  ;;  %v1695_v45 = vld [vmem:[#allocation2 + $0x68] sm:$0xff] }
  0x14   :  { %226 = vmatpush.msrb.mxu0 %v1604_v16  ;;  %243 = vmatpush.msrb.mxu1 %v1635_v26  ;;  %v1690_v43 = vld [vmem:[#allocation2 + $0x18] sm:$0xff]  ;;  %v1692_v44 = vld [vmem:[#allocation2 + $0x100] sm:$0xff]  ;;  %v50_v46 = vld [vmem:[%s2390_s2 + $0x10] sm:$0xff] }
  0x15   :  { %210 = vmatpush.msra.mxu3 %v1610_v18  ;;  %1296 = vmatmul.msk.f32.gmra.mxu0 %vm119_vm0, %v1624_v22  ;;  %2429 = vst [vmem:[#allocation6_spill] sm:$0xff] %v1690_v43  ;;  %v1702_v47 = vld [vmem:[#allocation2] sm:$0xff]  ;;  %v1704_v48 = vld [vmem:[#allocation2 + $0xe8] sm:$0xff]  ;;  %v1714_v50 = vld [vmem:[#allocation2 + $0x50] sm:$0xff] }
  0x16   :  { %227 = vmatpush.msrb.mxu0 %v1616_v20  ;;  %244 = vmatpush.msrb.mxu1 %v1645_v29  ;;  %2430 = vst [vmem:[#allocation7_spill] sm:$0xff] %v1702_v47  ;;  %v1712_v49 = vld [vmem:[%s2389_s1] sm:$0x3]  ;;  %v1718_v51 = vld [vmem:[#allocation2 + $0xd0] sm:$0xff]  ;;  %v1721_v52 = vld [vmem:[#allocation2 + $0x38] sm:$0xff] }
  0x17   :  { %211 = vmatpush.msra.mxu3 %v1619_v21  ;;  %185 = vmatpush.msra.mxu2 %v56_v35  ;;  %2431 = vst [vmem:[#allocation8_spill] sm:$0xff] %v1721_v52  ;;  %v1726_v53 = vld [vmem:[#allocation2 + $0xb8] sm:$0xff]  ;;  %v1728_v54 = vld [vmem:[#allocation2 + $0x20] sm:$0xff]  ;;  %v1737_v56 = vld [vmem:[#allocation2 + $0x8] sm:$0xff] }
  0x18   :  { %228 = vmatpush.msrb.mxu0 %v1627_v23  ;;  %245 = vmatpush.msrb.mxu1 %v1661_v34  ;;  %2432 = vst [vmem:[#allocation9_spill] sm:$0xff] %v1728_v54  ;;  %v1734_v55 = vld [vmem:[#allocation2 + $0xa0] sm:$0xff]  ;;  %v1742_v57 = vld [vmem:[#allocation2 + $0x88] sm:$0xff]  ;;  %v1748_v58 = vld [vmem:[#allocation2 + $0x70] sm:$0xff] }
  0x19   :  { %212 = vmatpush.msra.mxu3 %v1633_v25  ;;  %186 = vmatpush.msra.mxu2 %v53_v39  ;;  %2433 = vst [vmem:[#allocation10_spill] sm:$0xff] %v1737_v56  ;;  %v1753_v59 = vld [vmem:[#allocation2 + $0x58] sm:$0xff]  ;;  %v1759_v60 = vld [vmem:[#allocation2 + $0x40] sm:$0xff]  ;;  %v1765_v61 = vld [vmem:[#allocation2 + $0x28] sm:$0xff] }
  0x1a   :  { %229 = vmatpush.msrb.mxu0 %v1638_v27  ;;  %246 = vmatpush.msrb.mxu1 %v1671_v37  ;;  %2434 = vst [vmem:[#allocation11_spill] sm:$0xff] %v1765_v61  ;;  %v1771_v62 = vld [vmem:[#allocation2 + $0x10] sm:$0xff]  ;;  %v1895_v0 = vld [vmem:[%s2391_s3] sm:$0x7] }
  0x1b   :  { %213 = vmatpush.msra.mxu3 %v1643_v28  ;;  %1298 = vmatmul.msk.f32.gmra.mxu1 %vm119_vm0, %v1624_v22  ;;  %2435 = vst [vmem:[#allocation12_spill] sm:$0xff] %v1771_v62  ;;  %v113_v2 = vperm.slane %v1895_v0, 0  ;;  %v114_v15 = vperm.slane %v1895_v0, 1 }
  0x1c   :  { %230 = vmatpush.msrb.mxu0 %v1648_v30  ;;  %247 = vmatpush.msrb.mxu1 %v1683_v41  ;;  %2436 = vst [vmem:[#allocation13_spill] sm:$0xff] %v1895_v0 }
  0x1d   :  { %214 = vmatpush.msra.mxu3 %v1655_v32  ;;  %187 = vmatpush.msra.mxu2 %v50_v46 }
  0x1e   :  { %231 = vmatpush.msrb.mxu0 %v1657_v33  ;;  %248 = vmatpush.msrb.mxu1 %v1692_v44 }
  0x1f   :  { %215 = vmatpush.msra.mxu3 %v1669_v36  ;;  %1299 = vmatmul.msk.f32.vlgmr.msra.gmra.mxu2 %vm119_vm0, %v1587_v11 }
  0x20   :  { %232 = vmatpush.msrb.mxu0 %v1674_v38  ;;  %249 = vmatpush.msrb.mxu1 %v1704_v48 }
  0x21   :  { %216 = vmatpush.msra.mxu3 %v1681_v40  ;;  %310 = vmatpush.msrb.mxu2 %v1557_v1 }
  0x22   :  { %233 = vmatpush.msrb.mxu0 %v1686_v42  ;;  %250 = vmatpush.msrb.mxu1 %v1718_v51 }
  0x23   :  { %217 = vmatpush.msra.mxu3 %v1690_v43  ;;  %311 = vmatpush.msrb.mxu2 %v1563_v3 }
  0x24   :  { %234 = vmatpush.msrb.mxu0 %v1695_v45  ;;  %251 = vmatpush.msrb.mxu1 %v1726_v53 }
  0x25   :  { %218 = vmatpush.msra.mxu3 %v1702_v47  ;;  %312 = vmatpush.msrb.mxu2 %v1568_v5 }
  0x26   :  { %219 = vmatmul.f32.vlgmr.msra.gmra.mxu3 %v1712_v49  ;;  %235 = vmatpush.msrb.mxu0 %v1714_v50 }
  0x27   :  { %330 = vmatpush.msrb.mxu3 %v1577_v8  ;;  %252 = vmatpush.msrb.mxu1 %v1734_v55 }
  0x28   :  { %236 = vmatpush.msrb.mxu0 %v1721_v52  ;;  %313 = vmatpush.msrb.mxu2 %v1574_v7 }
  0x29   :  { %331 = vmatpush.msrb.mxu3 %v1582_v10  ;;  %253 = vmatpush.msrb.mxu1 %v1742_v57 }
  0x2a   :  { %237 = vmatpush.msrb.mxu0 %v1728_v54  ;;  %314 = vmatpush.msrb.mxu2 %v1579_v9 }
  0x2b   :  { %332 = vmatpush.msrb.mxu3 %v1593_v13  ;;  %254 = vmatpush.msrb.mxu1 %v1748_v58 }
  0x2c   :  { %238 = vmatpush.msrb.mxu0 %v1737_v56  ;;  %315 = vmatpush.msrb.mxu2 %v1590_v12 }
  0x2d   :  { %239 = vmatmul.f32.vlgmr.msrb.gmra.mxu0 %v1712_v49  ;;  %333 = vmatpush.msrb.mxu3 %v1604_v16 }
  0x2e   :  { %350 = vmatpush.msra.mxu0 %v1635_v26  ;;  %255 = vmatpush.msrb.mxu1 %v1753_v59 }
  0x2f   :  { %334 = vmatpush.msrb.mxu3 %v1616_v20  ;;  %316 = vmatpush.msrb.mxu2 %v1598_v14 }
  0x30   :  { %351 = vmatpush.msra.mxu0 %v1645_v29  ;;  %256 = vmatpush.msrb.mxu1 %v1759_v60 }
  0x31   :  { %335 = vmatpush.msrb.mxu3 %v1627_v23  ;;  %317 = vmatpush.msrb.mxu2 %v1610_v18 }
  0x32   :  { %352 = vmatpush.msra.mxu0 %v1661_v34  ;;  %257 = vmatpush.msrb.mxu1 %v1765_v61 }
  0x33   :  { %336 = vmatpush.msrb.mxu3 %v1638_v27  ;;  %318 = vmatpush.msrb.mxu2 %v1619_v21 }
  0x34   :  { %353 = vmatpush.msra.mxu0 %v1671_v37  ;;  %258 = vmatpush.msrb.mxu1 %v1771_v62 }
  0x35   :  { %259 = vmatmul.f32.vlgmr.msrb.gmra.mxu1 %v1712_v49  ;;  %337 = vmatpush.msrb.mxu3 %v1648_v30 }
  0x36   :  { %354 = vmatpush.msra.mxu0 %v1683_v41  ;;  %1300 = vmatmul.msk.f32.gmra.mxu2 %vm119_vm0, %v1624_v22  ;;  %v109_v22 = vld [vmem:[%s2393_s5] sm:$0x7] }
  0x37   :  { %338 = vmatpush.msrb.mxu3 %v1657_v33  ;;  %319 = vmatpush.msrb.mxu2 %v1633_v25  ;;  %v1906_v24 = vperm.slane %v109_v22, 0  ;;  %v1908_v31 = vperm.slane %v109_v22, 1 }
  0x38   :  { %355 = vmatpush.msra.mxu0 %v1692_v44  ;;  %432 = vmatpush.msra.mxu1 %v1557_v1 }
  0x39   :  { %339 = vmatpush.msrb.mxu3 %v1674_v38  ;;  %320 = vmatpush.msrb.mxu2 %v1643_v28  ;;  %2439 = vst [vmem:[#allocation16_spill] sm:$0xff] %v1906_v24 }
  0x3a   :  { %356 = vmatpush.msra.mxu0 %v1704_v48  ;;  %433 = vmatpush.msra.mxu1 %v1563_v3  ;;  %2440 = vst [vmem:[#allocation17_spill] sm:$0xff] %v1908_v31 }
  0x3b   :  { %340 = vmatpush.msrb.mxu3 %v1686_v42  ;;  %321 = vmatpush.msrb.mxu2 %v1655_v32 }
  0x3c   :  { %357 = vmatpush.msra.mxu0 %v1718_v51  ;;  %434 = vmatpush.msra.mxu1 %v1568_v5 }
  0x3d   :  { %341 = vmatpush.msrb.mxu3 %v1695_v45  ;;  %322 = vmatpush.msrb.mxu2 %v1669_v36 }
  0x3e   :  { %358 = vmatpush.msra.mxu0 %v1726_v53  ;;  %435 = vmatpush.msra.mxu1 %v1574_v7 }
  0x3f   :  { %342 = vmatpush.msrb.mxu3 %v1714_v50  ;;  %323 = vmatpush.msrb.mxu2 %v1681_v40 }
  0x40   :  { %359 = vmatpush.msra.mxu0 %v1734_v55  ;;  %436 = vmatpush.msra.mxu1 %v1579_v9 }
  0x41   :  { %343 = vmatpush.msrb.mxu3 %v1721_v52  ;;  %324 = vmatpush.msrb.mxu2 %v1690_v43 }
  0x42   :  { %360 = vmatpush.msra.mxu0 %v1742_v57  ;;  %437 = vmatpush.msra.mxu1 %v1590_v12 }
  0x43   :  { %344 = vmatpush.msrb.mxu3 %v1728_v54  ;;  %325 = vmatpush.msrb.mxu2 %v1702_v47 }
  0x44   :  { %361 = vmatpush.msra.mxu0 %v1748_v58  ;;  %438 = vmatpush.msra.mxu1 %v1598_v14 }
  0x45   :  { %452 = vmatpush.msra.mxu2 %v1577_v8  ;;  %345 = vmatpush.msrb.mxu3 %v1737_v56 }
  0x46   :  { %362 = vmatpush.msra.mxu0 %v1753_v59  ;;  %439 = vmatpush.msra.mxu1 %v1610_v18 }
  0x47   :  { %472 = vmatpush.msra.mxu3 %v1635_v26  ;;  %453 = vmatpush.msra.mxu2 %v1582_v10 }
  0x48   :  { %363 = vmatpush.msra.mxu0 %v1759_v60  ;;  %440 = vmatpush.msra.mxu1 %v1619_v21 }
  0x49   :  { %473 = vmatpush.msra.mxu3 %v1645_v29  ;;  %454 = vmatpush.msra.mxu2 %v1593_v13 }
  0x4a   :  { %364 = vmatpush.msra.mxu0 %v1765_v61  ;;  %441 = vmatpush.msra.mxu1 %v1633_v25 }
  0x4b   :  { %474 = vmatpush.msra.mxu3 %v1661_v34  ;;  %455 = vmatpush.msra.mxu2 %v1604_v16 }
  0x4c   :  { %365 = vmatpush.msra.mxu0 %v1771_v62  ;;  %442 = vmatpush.msra.mxu1 %v1643_v28 }
  0x4d   :  { %475 = vmatpush.msra.mxu3 %v1671_v37  ;;  %456 = vmatpush.msra.mxu2 %v1616_v20 }
  0x4e   :  { %553 = vmatpush.msrb.mxu0 %v1557_v1  ;;  %443 = vmatpush.msra.mxu1 %v1655_v32 }
  0x4f   :  { %476 = vmatpush.msra.mxu3 %v1683_v41  ;;  %457 = vmatpush.msra.mxu2 %v1627_v23 }
  0x50   :  { %554 = vmatpush.msrb.mxu0 %v1563_v3  ;;  %444 = vmatpush.msra.mxu1 %v1669_v36 }
  0x51   :  { %477 = vmatpush.msra.mxu3 %v1692_v44  ;;  %458 = vmatpush.msra.mxu2 %v1638_v27 }
  0x52   :  { %555 = vmatpush.msrb.mxu0 %v1568_v5  ;;  %445 = vmatpush.msra.mxu1 %v1681_v40 }
  0x53   :  { %478 = vmatpush.msra.mxu3 %v1704_v48  ;;  %459 = vmatpush.msra.mxu2 %v1648_v30 }
  0x54   :  { %556 = vmatpush.msrb.mxu0 %v1574_v7  ;;  %446 = vmatpush.msra.mxu1 %v1690_v43 }
  0x55   :  { %479 = vmatpush.msra.mxu3 %v1718_v51  ;;  %460 = vmatpush.msra.mxu2 %v1657_v33 }
  0x56   :  { %557 = vmatpush.msrb.mxu0 %v1579_v9  ;;  %447 = vmatpush.msra.mxu1 %v1702_v47 }
  0x57   :  { %480 = vmatpush.msra.mxu3 %v1726_v53  ;;  %461 = vmatpush.msra.mxu2 %v1674_v38 }
  0x58   :  { %558 = vmatpush.msrb.mxu0 %v1590_v12  ;;  %573 = vmatpush.msrb.mxu1 %v1577_v8 }
  0x59   :  { %481 = vmatpush.msra.mxu3 %v1734_v55  ;;  %462 = vmatpush.msra.mxu2 %v1686_v42 }
  0x5a   :  { %559 = vmatpush.msrb.mxu0 %v1598_v14  ;;  %574 = vmatpush.msrb.mxu1 %v1582_v10 }
  0x5b   :  { %482 = vmatpush.msra.mxu3 %v1742_v57  ;;  %463 = vmatpush.msra.mxu2 %v1695_v45 }
  0x5c   :  { %560 = vmatpush.msrb.mxu0 %v1610_v18  ;;  %575 = vmatpush.msrb.mxu1 %v1593_v13 }
  0x5d   :  { %483 = vmatpush.msra.mxu3 %v1748_v58  ;;  %464 = vmatpush.msra.mxu2 %v1714_v50 }
  0x5e   :  { %561 = vmatpush.msrb.mxu0 %v1619_v21  ;;  %576 = vmatpush.msrb.mxu1 %v1604_v16 }
  0x5f   :  { %484 = vmatpush.msra.mxu3 %v1753_v59  ;;  %465 = vmatpush.msra.mxu2 %v1721_v52 }
  0x60   :  { %562 = vmatpush.msrb.mxu0 %v1633_v25  ;;  %577 = vmatpush.msrb.mxu1 %v1616_v20 }
  0x61   :  { %485 = vmatpush.msra.mxu3 %v1759_v60  ;;  %466 = vmatpush.msra.mxu2 %v1728_v54 }
  0x62   :  { %563 = vmatpush.msrb.mxu0 %v1643_v28  ;;  %578 = vmatpush.msrb.mxu1 %v1627_v23 }
  0x63   :  { %486 = vmatpush.msra.mxu3 %v1765_v61  ;;  %467 = vmatpush.msra.mxu2 %v1737_v56 }
  0x64   :  { %564 = vmatpush.msrb.mxu0 %v1655_v32  ;;  %579 = vmatpush.msrb.mxu1 %v1638_v27 }
  0x65   :  { %487 = vmatpush.msra.mxu3 %v1771_v62 }
  0x66   :  { %565 = vmatpush.msrb.mxu0 %v1669_v36  ;;  %580 = vmatpush.msrb.mxu1 %v1648_v30 }
  0x68   :  { %566 = vmatpush.msrb.mxu0 %v1681_v40  ;;  %581 = vmatpush.msrb.mxu1 %v1657_v33 }
  0x6a   :  { %567 = vmatpush.msrb.mxu0 %v1690_v43  ;;  %582 = vmatpush.msrb.mxu1 %v1674_v38 }
  0x6c   :  { %568 = vmatpush.msrb.mxu0 %v1702_v47  ;;  %583 = vmatpush.msrb.mxu1 %v1686_v42 }
  0x6e   :  { %584 = vmatpush.msrb.mxu1 %v1695_v45 }
  0x70   :  { %585 = vmatpush.msrb.mxu1 %v1714_v50 }
  0x72   :  { %586 = vmatpush.msrb.mxu1 %v1721_v52 }
  0x74   :  { %587 = vmatpush.msrb.mxu1 %v1728_v54 }
  0x76   :  { %588 = vmatpush.msrb.mxu1 %v1737_v56 }
  0x8a   :  { %v143_v63 = vpop.f32.mrf.mxu0 }
  0x8b   :  { %v1912_v46 = vadd.f32 %v143_v63, %v113_v2 }
  0x8d   :  { %2442 = vst [vmem:[#allocation19_spill] sm:$0xff] %v1912_v46 }
  0x90   :  { %v166_v11 = vpop.f32.mrf.mxu1 }
  0x91   :  { %v1910_v39 = vadd.f32 %v166_v11, %v114_v15 }
  0x92   :  { %v146_v4 = vpop.f32.mrf.mxu0 }
  0x93   :  { %v1898_v6 = vadd.f32 %v146_v4, %v113_v2  ;;  %2441 = vst [vmem:[#allocation18_spill] sm:$0xff] %v1910_v39 }
  0x95   :  { %2437 = vst [vmem:[#allocation14_spill] sm:$0xff] %v1898_v6 }
  0x98   :  { %v169_v17 = vpop.f32.mrf.mxu1 }
  0x99   :  { %v1901_v19 = vadd.f32 %v169_v17, %v114_v15 }
  0x9b   :  { %2438 = vst [vmem:[#allocation15_spill] sm:$0xff] %v1901_v19 }
  0xa9   :  { %v220_v35 = vpop.f32.mrf.mxu3 }
  0xaa   :  { %v221_v4 = vadd.f32 %v220_v35, %v1906_v24  ;;  %v240_v6 = vpop.f32.mrf.mxu0  ;;  %v1918_v24 = vperm.slane %v109_v22, 2 }
  0xab   :  { %v241_v56 = vadd.f32 %v240_v6, %v1908_v31 }
  0xac   :  { %v263_v17 = vadd.f32 %v221_v4, %v1912_v46  ;;  %2443 = vst [vmem:[#allocation20_spill] sm:$0xff] %v1918_v24 }
  0xad   :  { %v283_v19 = vadd.f32 %v241_v56, %v1910_v39 }
  0xae   :  { %v1301_v47 = vmul.f32 -1.442695, %v263_v17 }
  0xaf   :  { %v1302_v62 = vmul.f32 -1.442695, %v283_v19 }
  0xb0   :  { %1328 = vpow2.f32 %v1301_v47 }
  0xb1   :  { %1330 = vpow2.f32 %v1302_v62  ;;  %v2424_v62 = vperm.slane %v1895_v0, 2 }
  0xb2   :  { %v260_v46 = vpop.f32.mrf.mxu1 }
  0xb6   :  { %v1329_v54 = vpop.eup %1328 }
  0xb7   :  { %v1331_v43 = vpop.eup %1330  ;;  %v267_v61 = vadd.f32 1.0, %v1329_v54  ;;  %v189_v54 = vpop.f32.mrf.mxu2 }
  0xb8   :  { %v287_v11 = vadd.f32 1.0, %v1331_v43  ;;  %v261_v43 = vadd.f32 %v260_v46, %v1918_v24  ;;  %v1924_v22 = vadd.f32 %v189_v54, %v2424_v62  ;;  %v2456_v62 = vld [vmem:[#allocation18_spill] sm:$0xff] }
  0xb9   :  { %1332 = vrcp.f32 %v267_v61  ;;  %v279_v56 = vand.u32 2147483648, %v267_v61  ;;  %v277_v47 = vand.u32 2147483647, %v267_v61  ;;  %vm273_vm2 = vweird.f32 %v267_v61 }
  0xba   :  { %1334 = vrcp.f32 %v287_v11  ;;  %vm293_vm5 = vweird.f32 %v287_v11 }
  0xbb   :  { %v280_v31 = vor.u32 1.1754944e-38, %v279_v56  ;;  %vm278_vm4 = vcmp.eq.f32.partialorder %v277_v47, 8.507059e+37 }
  0xbf   :  { %v1333_v63 = vpop.eup %1332 }
  0xc0   :  { %v1335_v2 = vpop.eup %1334  ;;  %v269_v15 = vmul.f32 %v1333_v63, %v267_v61  ;;  %vm274_vm1 = vweird.f32 %v1333_v63 }
  0xc1   :  { %v289_v35 = vmul.f32 %v1335_v2, %v287_v11  ;;  %vm275_vm3 = vmor %vm273_vm2, %vm274_vm1  ;;  %vm294_vm6 = vweird.f32 %v1335_v2 }
  0xc2   :  { %v270_v6 = vsub.f32 1.0, %v269_v15  ;;  %vm295_vm7 = vmor %vm293_vm5, %vm294_vm6 }
  0xc3   :  { %v290_v4 = vsub.f32 1.0, %v289_v35 }
  0xc4   :  { %v271_v17 = vmul.f32 %v1333_v63, %v270_v6  ;;  %v299_v6 = vand.u32 2147483648, %v287_v11 }
  0xc5   :  { %v291_v19 = vmul.f32 %v1335_v2, %v290_v4  ;;  %v297_v4 = vand.u32 2147483647, %v287_v11  ;;  %v2448_v11 = vld [vmem:[#allocation9_spill] sm:$0xff] }
  0xc6   :  { %v272_v39 = vadd.f32 %v1333_v63, %v271_v17  ;;  %v300_v61 = vor.u32 1.1754944e-38, %v299_v6 }
  0xc7   :  { %v292_v15 = vadd.f32 %v1335_v2, %v291_v19  ;;  %vm298_vm8 = vcmp.eq.f32.partialorder %v297_v4, 8.507059e+37 }
  0xc8   :  { %v276_v52 = vsel %vm275_vm3, %v1333_v63, %v272_v39 }
  0xc9   :  { %v281_v35 = vsel %vm278_vm4, %v280_v31, %v276_v52  ;;  %v296_v17 = vsel %vm295_vm7, %v1335_v2, %v292_v15  ;;  %v2446_v52 = vld [vmem:[#allocation11_spill] sm:$0xff]  ;;  %v2447_v31 = vld [vmem:[#allocation6_spill] sm:$0xff]  ;;  %v2449_v2 = vld [vmem:[#allocation12_spill] sm:$0xff] }
  0xca   :  { %v303_v40 = vmul.f32 %v281_v35, %v261_v43  ;;  %v301_v39 = vsel %vm298_vm8, %v300_v61, %v296_v17  ;;  %v2450_v43 = vld [vmem:[#allocation7_spill] sm:$0xff]  ;;  %v2451_v15 = vld [vmem:[#allocation10_spill] sm:$0xff]  ;;  %v1981_v35 = vpop.f32.mrf.mxu2  ;;  %v2454_v61 = vld [vmem:[#allocation17_spill] sm:$0xff] }
  0xcb   :  { %v306_v63 = vsub.f32 1.0, %v301_v39  ;;  %v308_v54 = vmul.f32 %v301_v39, %v1712_v49  ;;  %v2445_v49 = vld [vmem:[#allocation8_spill] sm:$0xff]  ;;  %2452 = vst [vmem:[#allocation21_spill] sm:$0xff] %v1981_v35 }
  0xcc   :  { %v304_v46 = vadd.f32 %v303_v40, %v1924_v22  ;;  %v2444_v40 = vld [vmem:[#allocation5_spill] sm:$0xff] }
  0xce   :  { %1336 = vtanh.f32 %v304_v46  ;;  %v2453_v46 = vld [vmem:[#allocation16_spill] sm:$0xff] }
  0xd4   :  { %v1337_v56 = vpop.eup %1336 }
  0xd5   :  { %v307_v47 = vmul.f32 %v1337_v56, %v306_v63 }
  0xd7   :  { %v1928_v19 = vadd.f32 %v308_v54, %v307_v47  ;;  %v2455_v47 = vld [vmem:[#allocation19_spill] sm:$0xff] }
  0xd9   :  { %326 = vmatmul.f32.vlgmr.msrb.gmra.mxu2 %v1928_v19  ;;  %346 = vmatmul.f32.vlgmr.msrb.gmra.mxu3 %v1928_v19 }
  0xda   :  { %366 = vmatmul.f32.vlgmr.msra.gmra.mxu0 %v1928_v19  ;;  %593 = vmatpush.msrb.mxu2 %v1635_v26 }
  0xdb   :  { %674 = vmatpush.msrb.mxu3 %v1557_v1  ;;  %694 = vmatpush.msra.mxu0 %v1577_v8 }
  0xdc   :  { %594 = vmatpush.msrb.mxu2 %v1645_v29 }
  0xdd   :  { %675 = vmatpush.msrb.mxu3 %v1563_v3  ;;  %695 = vmatpush.msra.mxu0 %v1582_v10 }
  0xde   :  { %595 = vmatpush.msrb.mxu2 %v1661_v34 }
  0xdf   :  { %676 = vmatpush.msrb.mxu3 %v1568_v5  ;;  %696 = vmatpush.msra.mxu0 %v1593_v13 }
  0xe0   :  { %596 = vmatpush.msrb.mxu2 %v1671_v37 }
  0xe1   :  { %677 = vmatpush.msrb.mxu3 %v1574_v7  ;;  %697 = vmatpush.msra.mxu0 %v1604_v16 }
  0xe2   :  { %597 = vmatpush.msrb.mxu2 %v1683_v41 }
  0xe3   :  { %678 = vmatpush.msrb.mxu3 %v1579_v9  ;;  %698 = vmatpush.msra.mxu0 %v1616_v20 }
  0xe4   :  { %598 = vmatpush.msrb.mxu2 %v1692_v44 }
  0xe5   :  { %679 = vmatpush.msrb.mxu3 %v1590_v12  ;;  %699 = vmatpush.msra.mxu0 %v1627_v23 }
  0xe6   :  { %599 = vmatpush.msrb.mxu2 %v1704_v48 }
  0xe7   :  { %680 = vmatpush.msrb.mxu3 %v1598_v14  ;;  %700 = vmatpush.msra.mxu0 %v1638_v27 }
  0xe8   :  { %600 = vmatpush.msrb.mxu2 %v1718_v51 }
  0xe9   :  { %681 = vmatpush.msrb.mxu3 %v1610_v18  ;;  %701 = vmatpush.msra.mxu0 %v1648_v30 }
  0xea   :  { %601 = vmatpush.msrb.mxu2 %v1726_v53 }
  0xeb   :  { %682 = vmatpush.msrb.mxu3 %v1619_v21  ;;  %702 = vmatpush.msra.mxu0 %v1657_v33 }
  0xec   :  { %602 = vmatpush.msrb.mxu2 %v1734_v55 }
  0xed   :  { %683 = vmatpush.msrb.mxu3 %v1633_v25  ;;  %703 = vmatpush.msra.mxu0 %v1674_v38 }
  0xee   :  { %603 = vmatpush.msrb.mxu2 %v1742_v57 }
  0xef   :  { %684 = vmatpush.msrb.mxu3 %v1643_v28  ;;  %704 = vmatpush.msra.mxu0 %v1686_v42 }
  0xf0   :  { %604 = vmatpush.msrb.mxu2 %v1748_v58 }
  0xf1   :  { %685 = vmatpush.msrb.mxu3 %v1655_v32  ;;  %705 = vmatpush.msra.mxu0 %v1695_v45 }
  0xf2   :  { %605 = vmatpush.msrb.mxu2 %v1753_v59 }
  0xf3   :  { %686 = vmatpush.msrb.mxu3 %v1669_v36  ;;  %706 = vmatpush.msra.mxu0 %v1714_v50 }
  0xf4   :  { %606 = vmatpush.msrb.mxu2 %v1759_v60 }
  0xf5   :  { %687 = vmatpush.msrb.mxu3 %v2444_v40  ;;  %707 = vmatpush.msra.mxu0 %v2445_v49 }
  0xf6   :  { %607 = vmatpush.msrb.mxu2 %v2446_v52 }
  0xf7   :  { %688 = vmatpush.msrb.mxu3 %v2447_v31  ;;  %708 = vmatpush.msra.mxu0 %v2448_v11 }
  0xf8   :  { %608 = vmatpush.msrb.mxu2 %v2449_v2 }
  0xf9   :  { %689 = vmatpush.msrb.mxu3 %v2450_v43  ;;  %709 = vmatpush.msra.mxu0 %v2451_v15 }
 0x15c   :  { %v327_v6 = vpop.f32.mrf.mxu2  ;;  %v347_v4 = vpop.f32.mrf.mxu3 }
 0x15d   :  { %v328_v17 = vadd.f32 %v327_v6, %v2453_v46  ;;  %v348_v39 = vadd.f32 %v347_v4, %v2454_v61  ;;  %v367_v4 = vpop.f32.mrf.mxu0 }
 0x15f   :  { %v371_v63 = vrot.slane %v328_v17, 6  ;;  %v394_v56 = vrot.slane %v348_v39, 6 }
 0x161   :  { %v373_v54 = vadd.f32 %v371_v63, %v2455_v47  ;;  %v396_v0 = vadd.f32 %v394_v56, %v2456_v62  ;;  %v368_v56 = vadd.f32 %v367_v4, %v1918_v24 }
 0x163   :  { %v1303_v11 = vmul.f32 -1.442695, %v373_v54  ;;  %v1304_v2 = vmul.f32 -1.442695, %v396_v0 }
 0x165   :  { %1338 = vpow2.f32 %v1303_v11 }
 0x166   :  { %1340 = vpow2.f32 %v1304_v2 }
 0x16b   :  { %v1339_v43 = vpop.eup %1338 }
 0x16c   :  { %v1341_v15 = vpop.eup %1340  ;;  %v377_v31 = vadd.f32 1.0, %v1339_v43 }
 0x16d   :  { %v400_v35 = vadd.f32 1.0, %v1341_v15  ;;  %v417_v15 = vrot.slane %v368_v56, 6 }
 0x16e   :  { %1342 = vrcp.f32 %v377_v31  ;;  %v389_v61 = vand.u32 2147483648, %v377_v31  ;;  %v387_v0 = vand.u32 2147483647, %v377_v31  ;;  %vm383_vm10 = vweird.f32 %v377_v31 }
 0x16f   :  { %1344 = vrcp.f32 %v400_v35  ;;  %vm406_vm14 = vweird.f32 %v400_v35 }
 0x170   :  { %v390_v43 = vor.u32 1.1754944e-38, %v389_v61  ;;  %vm388_vm12 = vcmp.eq.f32.partialorder %v387_v0, 8.507059e+37  ;;  %v425_v61 = vrot.slane %v1928_v19, 6 }
 0x174   :  { %v1343_v52 = vpop.eup %1342 }
 0x175   :  { %v1345_v6 = vpop.eup %1344  ;;  %v379_v46 = vmul.f32 %v1343_v52, %v377_v31  ;;  %vm384_vm9 = vweird.f32 %v1343_v52 }
 0x176   :  { %v402_v17 = vmul.f32 %v1345_v6, %v400_v35  ;;  %vm385_vm11 = vmor %vm383_vm10, %vm384_vm9  ;;  %vm407_vm13 = vweird.f32 %v1345_v6  ;;  %vm1142_vm10 = vcmask 1041408  }
 0x177   :  { %v380_v39 = vsub.f32 1.0, %v379_v46  ;;  %v412_v46 = vand.u32 2147483648, %v400_v35  ;;  %vm408_vm15 = vmor %vm406_vm14, %vm407_vm13 }
 0x178   :  { %v403_v63 = vsub.f32 1.0, %v402_v17  ;;  %v410_v17 = vand.u32 2147483647, %v400_v35 }
 0x179   :  { %v381_v54 = vmul.f32 %v1343_v52, %v380_v39  ;;  %v413_v24 = vor.u32 1.1754944e-38, %v412_v46 }
 0x17a   :  { %v404_v11 = vmul.f32 %v1345_v6, %v403_v63  ;;  %vm411_vm1 = vcmp.eq.f32.partialorder %v410_v17, 8.507059e+37 }
 0x17b   :  { %v382_v2 = vadd.f32 %v1343_v52, %v381_v54 }
 0x17c   :  { %v405_v49 = vadd.f32 %v1345_v6, %v404_v11  ;;  %v2469_v11 = vld [vmem:[#allocation20_spill] sm:$0xff] }
 0x17d   :  { %v386_v62 = vsel %vm385_vm11, %v1343_v52, %v382_v2  ;;  %vm1144_vm11 = vcmask 1043456  }
 0x17e   :  { %v391_v47 = vsel %vm388_vm12, %v390_v43, %v386_v62  ;;  %v409_v39 = vsel %vm408_vm15, %v1345_v6, %v405_v49 }
 0x17f   :  { %v419_v40 = vmul.f32 %v417_v15, %v391_v47  ;;  %v414_v31 = vsel %vm411_vm1, %v413_v24, %v409_v39 }
 0x180   :  { %v422_v63 = vsub.f32 1.0, %v414_v31  ;;  %v427_v62 = vmul.f32 %v425_v61, %v414_v31 }
 0x181   :  { %v420_v4 = vadd.f32 %v419_v40, %v1924_v22 }
 0x183   :  { %1346 = vtanh.f32 %v420_v4 }
 0x189   :  { %v1347_v52 = vpop.eup %1346 }
 0x18a   :  { %v423_v56 = vmul.f32 %v1347_v52, %v422_v63 }
 0x18c   :  { %v1990_v54 = vadd.f32 %v427_v62, %v423_v56 }
 0x18e   :  { %v430_v47 = vrot.slane %v1990_v54, 2 }
 0x190   :  { %448 = vmatmul.f32.vlgmr.msra.gmra.mxu1 %v430_v47  ;;  %468 = vmatmul.f32.vlgmr.msra.gmra.mxu2 %v430_v47 }
 0x191   :  { %488 = vmatmul.f32.vlgmr.msra.gmra.mxu3 %v430_v47  ;;  %714 = vmatpush.msra.mxu1 %v1635_v26  ;;  %v2467_v26 = vld [vmem:[#allocation17_spill] sm:$0xff] }
 0x192   :  { %781 = vmatpush.msra.mxu2 %v1557_v1  ;;  %801 = vmatpush.msra.mxu3 %v1577_v8  ;;  %v2457_v1 = vld [vmem:[#allocation5_spill] sm:$0xff] }
 0x193   :  { %715 = vmatpush.msra.mxu1 %v1645_v29  ;;  %v2461_v8 = vld [vmem:[#allocation9_spill] sm:$0xff] }
 0x194   :  { %782 = vmatpush.msra.mxu2 %v1563_v3  ;;  %802 = vmatpush.msra.mxu3 %v1582_v10  ;;  %v2458_v3 = vld [vmem:[#allocation8_spill] sm:$0xff]  ;;  %v2463_v10 = vld [vmem:[#allocation7_spill] sm:$0xff] }
 0x195   :  { %716 = vmatpush.msra.mxu1 %v1661_v34 }
 0x196   :  { %783 = vmatpush.msra.mxu2 %v1568_v5  ;;  %803 = vmatpush.msra.mxu3 %v1593_v13  ;;  %v2459_v5 = vld [vmem:[#allocation11_spill] sm:$0xff] }
 0x197   :  { %717 = vmatpush.msra.mxu1 %v1671_v37 }
 0x198   :  { %784 = vmatpush.msra.mxu2 %v1574_v7  ;;  %804 = vmatpush.msra.mxu3 %v1604_v16  ;;  %v2460_v7 = vld [vmem:[#allocation6_spill] sm:$0xff] }
 0x199   :  { %718 = vmatpush.msra.mxu1 %v1683_v41 }
 0x19a   :  { %785 = vmatpush.msra.mxu2 %v1579_v9  ;;  %805 = vmatpush.msra.mxu3 %v1616_v20  ;;  %v2462_v9 = vld [vmem:[#allocation12_spill] sm:$0xff]  ;;  %v2466_v20 = vld [vmem:[#allocation19_spill] sm:$0xff] }
 0x19b   :  { %719 = vmatpush.msra.mxu1 %v1692_v44 }
 0x19c   :  { %786 = vmatpush.msra.mxu2 %v1590_v12  ;;  %806 = vmatpush.msra.mxu3 %v1627_v23  ;;  %v2464_v12 = vld [vmem:[#allocation10_spill] sm:$0xff] }
 0x19d   :  { %720 = vmatpush.msra.mxu1 %v1704_v48 }
 0x19e   :  { %787 = vmatpush.msra.mxu2 %v1598_v14  ;;  %807 = vmatpush.msra.mxu3 %v1638_v27  ;;  %v2465_v14 = vld [vmem:[#allocation16_spill] sm:$0xff] }
 0x19f   :  { %721 = vmatpush.msra.mxu1 %v1718_v51 }
 0x1a0   :  { %788 = vmatpush.msra.mxu2 %v1610_v18  ;;  %808 = vmatpush.msra.mxu3 %v1648_v30  ;;  %v2468_v30 = vld [vmem:[#allocation18_spill] sm:$0xff] }
 0x1a1   :  { %722 = vmatpush.msra.mxu1 %v1726_v53 }
 0x1a2   :  { %789 = vmatpush.msra.mxu2 %v1619_v21  ;;  %809 = vmatpush.msra.mxu3 %v1657_v33 }
 0x1a3   :  { %723 = vmatpush.msra.mxu1 %v1734_v55 }
 0x1a4   :  { %790 = vmatpush.msra.mxu2 %v1633_v25  ;;  %810 = vmatpush.msra.mxu3 %v1674_v38 }
 0x1a5   :  { %724 = vmatpush.msra.mxu1 %v1742_v57 }
 0x1a6   :  { %791 = vmatpush.msra.mxu2 %v1643_v28  ;;  %811 = vmatpush.msra.mxu3 %v1686_v42 }
 0x1a7   :  { %725 = vmatpush.msra.mxu1 %v1748_v58 }
 0x1a8   :  { %792 = vmatpush.msra.mxu2 %v1655_v32  ;;  %812 = vmatpush.msra.mxu3 %v1695_v45 }
 0x1a9   :  { %726 = vmatpush.msra.mxu1 %v1753_v59 }
 0x1aa   :  { %793 = vmatpush.msra.mxu2 %v1669_v36  ;;  %813 = vmatpush.msra.mxu3 %v1714_v50 }
 0x1ab   :  { %727 = vmatpush.msra.mxu1 %v1759_v60 }
 0x1ac   :  { %794 = vmatpush.msra.mxu2 %v2457_v1  ;;  %814 = vmatpush.msra.mxu3 %v2458_v3 }
 0x1ad   :  { %728 = vmatpush.msra.mxu1 %v2459_v5 }
 0x1ae   :  { %795 = vmatpush.msra.mxu2 %v2460_v7  ;;  %815 = vmatpush.msra.mxu3 %v2461_v8 }
 0x1af   :  { %729 = vmatpush.msra.mxu1 %v2462_v9 }
 0x1b0   :  { %796 = vmatpush.msra.mxu2 %v2463_v10  ;;  %816 = vmatpush.msra.mxu3 %v2464_v12 }
 0x20d   :  { %v449_v13 = vpop.f32.mrf.mxu1 }
 0x20e   :  { %v450_v16 = vadd.f32 %v449_v13, %v2465_v14 }
 0x210   :  { %v493_v18 = vrot.slane %v450_v16, 4 }
 0x212   :  { %v495_v21 = vadd.f32 %v493_v18, %v2466_v20 }
 0x213   :  { %v469_v23 = vpop.f32.mrf.mxu2 }
 0x214   :  { %v1305_v25 = vmul.f32 -1.442695, %v495_v21  ;;  %v470_v27 = vadd.f32 %v469_v23, %v2467_v26  ;;  %v489_v35 = vpop.f32.mrf.mxu3  ;;  %v546_v21 = vrot.slane %v1990_v54, 6 }
 0x215   :  { %v490_v2 = vadd.f32 %v489_v35, %v2469_v11  ;;  %v2073_v35 = vld [vmem:[#allocation2 + $0x158] sm:$0xff] }
 0x216   :  { %1348 = vpow2.f32 %v1305_v25  ;;  %v516_v28 = vrot.slane %v470_v27, 4 }
 0x217   :  { %v539_v61 = vrot.slane %v490_v2, 4  ;;  %v2087_v2 = vld [vmem:[#allocation2 + $0x128] sm:$0xff] }
 0x218   :  { %v518_v32 = vadd.f32 %v516_v28, %v2468_v30 }
 0x21a   :  { %v1306_v33 = vmul.f32 -1.442695, %v518_v32 }
 0x21c   :  { %v1349_v36 = vpop.eup %1348  ;;  %1350 = vpow2.f32 %v1306_v33  ;;  %v1143_v33 = vsel %vm1142_vm10, %v1928_v19, %v1990_v54 }
 0x21d   :  { %v499_v38 = vadd.f32 1.0, %v1349_v36 }
 0x21f   :  { %1352 = vrcp.f32 %v499_v38  ;;  %v511_v0 = vand.u32 2147483648, %v499_v38  ;;  %v509_v15 = vand.u32 2147483647, %v499_v38  ;;  %vm505_vm3 = vweird.f32 %v499_v38 }
 0x221   :  { %v512_v39 = vor.u32 1.1754944e-38, %v511_v0  ;;  %vm510_vm5 = vcmp.eq.f32.partialorder %v509_v15, 8.507059e+37  ;;  %v2080_v0 = vld [vmem:[#allocation2 + $0x140] sm:$0xff]  ;;  %v2101_v15 = vld [vmem:[#allocation2 + $0xf8] sm:$0xff] }
 0x222   :  { %v1351_v42 = vpop.eup %1350 }
 0x223   :  { %v522_v24 = vadd.f32 1.0, %v1351_v42  ;;  %v2060_v42 = vld [vmem:[#allocation2 + $0x178] sm:$0xff] }
 0x225   :  { %v1353_v40 = vpop.eup %1352  ;;  %1354 = vrcp.f32 %v522_v24  ;;  %v534_v62 = vand.u32 2147483648, %v522_v24  ;;  %v532_v1 = vand.u32 2147483647, %v522_v24  ;;  %vm528_vm7 = vweird.f32 %v522_v24 }
 0x226   :  { %v501_v49 = vmul.f32 %v1353_v40, %v499_v38  ;;  %vm506_vm2 = vweird.f32 %v1353_v40 }
 0x227   :  { %vm507_vm4 = vmor %vm505_vm3, %vm506_vm2  ;;  %v535_v13 = vor.u32 1.1754944e-38, %v534_v62  ;;  %vm533_vm9 = vcmp.eq.f32.partialorder %v532_v1, 8.507059e+37 }
 0x228   :  { %v502_v6 = vsub.f32 1.0, %v501_v49  ;;  %v2070_v49 = vld [vmem:[#allocation2 + $0x150] sm:$0xff] }
 0x22a   :  { %v503_v43 = vmul.f32 %v1353_v40, %v502_v6  ;;  %v2077_v6 = vld [vmem:[#allocation2 + $0x138] sm:$0xff] }
 0x22b   :  { %v1355_v46 = vpop.eup %1354 }
 0x22c   :  { %v524_v17 = vmul.f32 %v1355_v46, %v522_v24  ;;  %v504_v4 = vadd.f32 %v1353_v40, %v503_v43  ;;  %vm529_vm6 = vweird.f32 %v1355_v46  ;;  %v2063_v24 = vld [vmem:[#allocation2 + $0x168] sm:$0xff]  ;;  %v2094_v43 = vld [vmem:[#allocation2 + $0x110] sm:$0xff] }
 0x22d   :  { %vm530_vm8 = vmor %vm528_vm7, %vm529_vm6 }
 0x22e   :  { %v525_v31 = vsub.f32 1.0, %v524_v17  ;;  %v508_v63 = vsel %vm507_vm4, %v1353_v40, %v504_v4  ;;  %v2066_v40 = vld [vmem:[#allocation2 + $0x170] sm:$0xff]  ;;  %v2115_v17 = vld [vmem:[#allocation2 + $0xc8] sm:$0xff] }
 0x22f   :  { %v513_v52 = vsel %vm510_vm5, %v512_v39, %v508_v63  ;;  %v2122_v4 = vld [vmem:[#allocation2 + $0xb0] sm:$0xff]  ;;  %v2129_v39 = vld [vmem:[#allocation2 + $0x98] sm:$0xff]  ;;  %v2145_v63 = vld [vmem:[#allocation2 + $0x48] sm:$0xff]  ;;  %vm1146_vm5 = vcmask 1045504  }
 0x230   :  { %v526_v56 = vmul.f32 %v1355_v46, %v525_v31  ;;  %v541_v47 = vmul.f32 %v539_v61, %v513_v52  ;;  %v2136_v31 = vld [vmem:[#allocation2 + $0x80] sm:$0xff] }
 0x232   :  { %v527_v7 = vadd.f32 %v1355_v46, %v526_v56  ;;  %v542_v10 = vadd.f32 %v541_v47, %v1924_v22 }
 0x234   :  { %v531_v16 = vsel %vm530_vm8, %v1355_v46, %v527_v7  ;;  %1356 = vtanh.f32 %v542_v10  ;;  %v2108_v46 = vld [vmem:[#allocation2 + $0xe0] sm:$0xff] }
 0x235   :  { %v536_v18 = vsel %vm533_vm9, %v535_v13, %v531_v16 }
 0x236   :  { %v544_v23 = vsub.f32 1.0, %v536_v18  ;;  %v548_v28 = vmul.f32 %v546_v21, %v536_v18 }
 0x23a   :  { %v1357_v25 = vpop.eup %1356 }
 0x23b   :  { %v545_v27 = vmul.f32 %v1357_v25, %v544_v23 }
 0x23d   :  { %v2050_v32 = vadd.f32 %v548_v28, %v545_v27 }
 0x23f   :  { %v551_v36 = vrot.slane %v2050_v32, 4  ;;  %v2058_v38 = vsel %vm1144_vm11, %v1143_v33, %v2050_v32 }
 0x241   :  { %569 = vmatmul.f32.vlgmr.msrb.gmra.mxu0 %v551_v36  ;;  %589 = vmatmul.f32.vlgmr.msrb.gmra.mxu1 %v551_v36 }
 0x242   :  { %609 = vmatmul.f32.vlgmr.msrb.gmra.mxu2 %v551_v36  ;;  %821 = vmatpush.msrb.mxu0 %v2060_v42 }
 0x243   :  { %903 = vmatpush.msrb.mxu1 %v2063_v24  ;;  %923 = vmatpush.msrb.mxu2 %v2066_v40 }
 0x244   :  { %822 = vmatpush.msrb.mxu0 %v1645_v29  ;;  %v2084_v29 = vld [vmem:[#allocation2 + $0x120] sm:$0xff] }
 0x245   :  { %904 = vmatpush.msrb.mxu1 %v2070_v49  ;;  %924 = vmatpush.msrb.mxu2 %v2073_v35 }
 0x246   :  { %823 = vmatpush.msrb.mxu0 %v1661_v34  ;;  %v2091_v34 = vld [vmem:[#allocation2 + $0x108] sm:$0xff] }
 0x247   :  { %905 = vmatpush.msrb.mxu1 %v2077_v6  ;;  %925 = vmatpush.msrb.mxu2 %v2080_v0 }
 0x248   :  { %824 = vmatpush.msrb.mxu0 %v1671_v37  ;;  %v2098_v37 = vld [vmem:[#allocation2 + $0xf0] sm:$0xff] }
 0x249   :  { %906 = vmatpush.msrb.mxu1 %v2084_v29  ;;  %926 = vmatpush.msrb.mxu2 %v2087_v2 }
 0x24a   :  { %825 = vmatpush.msrb.mxu0 %v1683_v41  ;;  %v2105_v41 = vld [vmem:[#allocation2 + $0xd8] sm:$0xff] }
 0x24b   :  { %907 = vmatpush.msrb.mxu1 %v2091_v34  ;;  %927 = vmatpush.msrb.mxu2 %v2094_v43 }
 0x24c   :  { %826 = vmatpush.msrb.mxu0 %v1692_v44  ;;  %v2112_v44 = vld [vmem:[#allocation2 + $0xc0] sm:$0xff] }
 0x24d   :  { %908 = vmatpush.msrb.mxu1 %v2098_v37  ;;  %928 = vmatpush.msrb.mxu2 %v2101_v15 }
 0x24e   :  { %827 = vmatpush.msrb.mxu0 %v1704_v48  ;;  %v2119_v48 = vld [vmem:[#allocation2 + $0xa8] sm:$0xff] }
 0x24f   :  { %909 = vmatpush.msrb.mxu1 %v2105_v41  ;;  %929 = vmatpush.msrb.mxu2 %v2108_v46 }
 0x250   :  { %828 = vmatpush.msrb.mxu0 %v1718_v51  ;;  %v2126_v51 = vld [vmem:[#allocation2 + $0x90] sm:$0xff] }
 0x251   :  { %910 = vmatpush.msrb.mxu1 %v2112_v44  ;;  %930 = vmatpush.msrb.mxu2 %v2115_v17 }
 0x252   :  { %829 = vmatpush.msrb.mxu0 %v1726_v53  ;;  %v2133_v53 = vld [vmem:[#allocation2 + $0x78] sm:$0xff] }
 0x253   :  { %911 = vmatpush.msrb.mxu1 %v2119_v48  ;;  %931 = vmatpush.msrb.mxu2 %v2122_v4 }
 0x254   :  { %830 = vmatpush.msrb.mxu0 %v1734_v55  ;;  %v2140_v55 = vld [vmem:[#allocation2 + $0x60] sm:$0xff] }
 0x255   :  { %912 = vmatpush.msrb.mxu1 %v2126_v51  ;;  %932 = vmatpush.msrb.mxu2 %v2129_v39 }
 0x256   :  { %831 = vmatpush.msrb.mxu0 %v1742_v57  ;;  %v2150_v57 = vld [vmem:[#allocation2 + $0x30] sm:$0xff] }
 0x257   :  { %913 = vmatpush.msrb.mxu1 %v2133_v53  ;;  %933 = vmatpush.msrb.mxu2 %v2136_v31 }
 0x258   :  { %832 = vmatpush.msrb.mxu0 %v1748_v58  ;;  %v2155_v58 = vld [vmem:[#allocation2 + $0x18] sm:$0xff] }
 0x259   :  { %914 = vmatpush.msrb.mxu1 %v2140_v55  ;;  %934 = vmatpush.msrb.mxu2 %v1695_v45  ;;  %v2160_v45 = vld [vmem:[#allocation2] sm:$0xff] }
 0x25a   :  { %833 = vmatpush.msrb.mxu0 %v1753_v59 }
 0x25b   :  { %915 = vmatpush.msrb.mxu1 %v2145_v63  ;;  %935 = vmatpush.msrb.mxu2 %v1714_v50 }
 0x25c   :  { %834 = vmatpush.msrb.mxu0 %v1759_v60 }
 0x25d   :  { %916 = vmatpush.msrb.mxu1 %v2150_v57  ;;  %936 = vmatpush.msrb.mxu2 %v2458_v3 }
 0x25e   :  { %835 = vmatpush.msrb.mxu0 %v2459_v5 }
 0x25f   :  { %917 = vmatpush.msrb.mxu1 %v2155_v58  ;;  %937 = vmatpush.msrb.mxu2 %v2461_v8 }
 0x260   :  { %836 = vmatpush.msrb.mxu0 %v2462_v9 }
 0x261   :  { %918 = vmatpush.msrb.mxu1 %v2160_v45  ;;  %938 = vmatpush.msrb.mxu2 %v2464_v12 }
 0x2be   :  { %v570_v50 = vpop.f32.mrf.mxu0  ;;  %v590_v59 = vpop.f32.mrf.mxu1 }
 0x2bf   :  { %v571_v60 = vadd.f32 %v570_v50, %v2465_v14  ;;  %v591_v3 = vadd.f32 %v590_v59, %v2467_v26 }
 0x2c1   :  { %v614_v5 = vrot.slane %v571_v60, 2  ;;  %v637_v61 = vrot.slane %v591_v3, 2 }
 0x2c3   :  { %v616_v52 = vadd.f32 %v614_v5, %v2466_v20  ;;  %v639_v8 = vadd.f32 %v637_v61, %v2468_v30 }
 0x2c5   :  { %v1307_v56 = vmul.f32 -1.442695, %v616_v52  ;;  %v1308_v9 = vmul.f32 -1.442695, %v639_v8  ;;  %v610_v18 = vpop.f32.mrf.mxu2 }
 0x2c6   :  { %v611_v30 = vadd.f32 %v610_v18, %v2469_v11 }
 0x2c7   :  { %1358 = vpow2.f32 %v1307_v56 }
 0x2c8   :  { %1360 = vpow2.f32 %v1308_v9  ;;  %v660_v60 = vrot.slane %v611_v30, 2 }
 0x2cd   :  { %v1359_v62 = vpop.eup %1358 }
 0x2ce   :  { %v1361_v47 = vpop.eup %1360  ;;  %v620_v1 = vadd.f32 1.0, %v1359_v62 }
 0x2cf   :  { %v643_v12 = vadd.f32 1.0, %v1361_v47 }
 0x2d0   :  { %1362 = vrcp.f32 %v620_v1  ;;  %v632_v20 = vand.u32 2147483648, %v620_v1  ;;  %v630_v28 = vand.u32 2147483647, %v620_v1  ;;  %vm626_vm13 = vweird.f32 %v620_v1 }
 0x2d1   :  { %1364 = vrcp.f32 %v643_v12  ;;  %v655_v61 = vand.u32 2147483648, %v643_v12  ;;  %vm649_vm2 = vweird.f32 %v643_v12  ;;  %v653_v8 = vand.u32 2147483647, %v643_v12 }
 0x2d2   :  { %v633_v50 = vor.u32 1.1754944e-38, %v632_v20  ;;  %vm631_vm15 = vcmp.eq.f32.partialorder %v630_v28, 8.507059e+37 }
 0x2d3   :  { %v656_v62 = vor.u32 1.1754944e-38, %v655_v61  ;;  %vm654_vm4 = vcmp.eq.f32.partialorder %v653_v8, 8.507059e+37 }
 0x2d6   :  { %v1363_v7 = vpop.eup %1362 }
 0x2d7   :  { %v1365_v10 = vpop.eup %1364  ;;  %v622_v13 = vmul.f32 %v1363_v7, %v620_v1  ;;  %vm627_vm12 = vweird.f32 %v1363_v7 }
 0x2d8   :  { %v645_v16 = vmul.f32 %v1365_v10, %v643_v12  ;;  %vm628_vm14 = vmor %vm626_vm13, %vm627_vm12  ;;  %vm650_vm1 = vweird.f32 %v1365_v10 }
 0x2d9   :  { %v623_v23 = vsub.f32 1.0, %v622_v13  ;;  %vm651_vm3 = vmor %vm649_vm2, %vm650_vm1 }
 0x2da   :  { %v646_v25 = vsub.f32 1.0, %v645_v16 }
 0x2db   :  { %v624_v27 = vmul.f32 %v1363_v7, %v623_v23 }
 0x2dc   :  { %v647_v33 = vmul.f32 %v1365_v10, %v646_v25 }
 0x2dd   :  { %v625_v36 = vadd.f32 %v1363_v7, %v624_v27 }
 0x2de   :  { %v648_v5 = vadd.f32 %v1365_v10, %v647_v33 }
 0x2df   :  { %v629_v59 = vsel %vm628_vm14, %v1363_v7, %v625_v36  ;;  %v667_v7 = vrot.slane %v2050_v32, 6 }
 0x2e0   :  { %v634_v3 = vsel %vm631_vm15, %v633_v50, %v629_v59  ;;  %v652_v9 = vsel %vm651_vm3, %v1365_v10, %v648_v5  ;;  %v2193_v10 = vld [vmem:[#allocation2 + $0x130] sm:$0xff] }
 0x2e1   :  { %v662_v52 = vmul.f32 %v660_v60, %v634_v3  ;;  %v657_v47 = vsel %vm654_vm4, %v656_v62, %v652_v9 }
 0x2e2   :  { %v665_v1 = vsub.f32 1.0, %v657_v47  ;;  %v669_v18 = vmul.f32 %v667_v7, %v657_v47 }
 0x2e3   :  { %v663_v56 = vadd.f32 %v662_v52, %v1924_v22  ;;  %v2183_v22 = vld [vmem:[#allocation2 + $0x160] sm:$0xff] }
 0x2e5   :  { %1366 = vtanh.f32 %v663_v56 }
 0x2eb   :  { %v1367_v13 = vpop.eup %1366 }
 0x2ec   :  { %v666_v16 = vmul.f32 %v1367_v13, %v665_v1 }
 0x2ee   :  { %v670_v23 = vadd.f32 %v669_v18, %v666_v16  ;;  %v2472_v16 = vld [vmem:[#allocation13_spill] sm:$0xff] }
 0x2ef   :  { %v2473_v18 = vperm.slane %v2472_v16, 2 }
 0x2f0   :  { %v2171_v25 = vrot.slane %v670_v23, 6  ;;  %v2175_v12 = vsel %vm1146_vm5, %v2058_v38, %v670_v23  ;;  %v2188_v38 = vld [vmem:[#allocation2 + $0x148] sm:$0xff]  ;;  %v2474_v23 = vld [vmem:[#allocation21_spill] sm:$0xff] }
 0x2f2   :  { %690 = vmatmul.f32.vlgmr.msrb.gmra.mxu3 %v2171_v25  ;;  %710 = vmatmul.f32.vlgmr.msra.gmra.mxu0 %v2171_v25 }
 0x2f3   :  { %730 = vmatmul.f32.vlgmr.msra.gmra.mxu1 %v2171_v25  ;;  %943 = vmatpush.msrb.mxu3 %v2060_v42 }
 0x2f4   :  { %1024 = vmatpush.msra.mxu0 %v2063_v24  ;;  %1044 = vmatpush.msra.mxu1 %v2066_v40  ;;  %v2198_v24 = vld [vmem:[#allocation2 + $0x118] sm:$0xff]  ;;  %v2203_v40 = vld [vmem:[#allocation2 + $0x100] sm:$0xff] }
 0x2f5   :  { %944 = vmatpush.msrb.mxu3 %v2183_v22 }
 0x2f6   :  { %1025 = vmatpush.msra.mxu0 %v2070_v49  ;;  %1045 = vmatpush.msra.mxu1 %v2073_v35  ;;  %v2208_v49 = vld [vmem:[#allocation2 + $0xe8] sm:$0xff]  ;;  %v2213_v35 = vld [vmem:[#allocation2 + $0xd0] sm:$0xff] }
 0x2f7   :  { %945 = vmatpush.msrb.mxu3 %v2188_v38 }
 0x2f8   :  { %1026 = vmatpush.msra.mxu0 %v2077_v6  ;;  %1046 = vmatpush.msra.mxu1 %v2080_v0  ;;  %v2218_v6 = vld [vmem:[#allocation2 + $0xb8] sm:$0xff]  ;;  %v2223_v0 = vld [vmem:[#allocation2 + $0xa0] sm:$0xff] }
 0x2f9   :  { %946 = vmatpush.msrb.mxu3 %v2193_v10 }
 0x2fa   :  { %1027 = vmatpush.msra.mxu0 %v2084_v29  ;;  %1047 = vmatpush.msra.mxu1 %v2087_v2  ;;  %v2228_v29 = vld [vmem:[#allocation2 + $0x88] sm:$0xff]  ;;  %v2233_v2 = vld [vmem:[#allocation2 + $0x70] sm:$0xff] }
 0x2fb   :  { %947 = vmatpush.msrb.mxu3 %v2198_v24 }
 0x2fc   :  { %1028 = vmatpush.msra.mxu0 %v2091_v34  ;;  %1048 = vmatpush.msra.mxu1 %v2094_v43  ;;  %v1461_v34 = vld [vmem:[#allocation2 + $0x68] sm:$0xff]  ;;  %v2237_v43 = vld [vmem:[#allocation2 + $0x58] sm:$0xff] }
 0x2fd   :  { %948 = vmatpush.msrb.mxu3 %v2203_v40 }
 0x2fe   :  { %1029 = vmatpush.msra.mxu0 %v2098_v37  ;;  %1049 = vmatpush.msra.mxu1 %v2101_v15  ;;  %v1463_v37 = vld [vmem:[#allocation2 + $0x50] sm:$0xff]  ;;  %v2241_v15 = vld [vmem:[#allocation2 + $0x40] sm:$0xff] }
 0x2ff   :  { %949 = vmatpush.msrb.mxu3 %v2208_v49 }
 0x300   :  { %1030 = vmatpush.msra.mxu0 %v2105_v41  ;;  %1050 = vmatpush.msra.mxu1 %v2108_v46  ;;  %v1465_v41 = vld [vmem:[#allocation2 + $0x38] sm:$0xff]  ;;  %v2245_v46 = vld [vmem:[#allocation2 + $0x28] sm:$0xff] }
 0x301   :  { %950 = vmatpush.msrb.mxu3 %v2213_v35 }
 0x302   :  { %1031 = vmatpush.msra.mxu0 %v2112_v44  ;;  %1051 = vmatpush.msra.mxu1 %v2115_v17  ;;  %v1467_v44 = vld [vmem:[#allocation2 + $0x20] sm:$0xff]  ;;  %v2249_v17 = vld [vmem:[#allocation2 + $0x10] sm:$0xff] }
 0x303   :  { %951 = vmatpush.msrb.mxu3 %v2218_v6 }
 0x304   :  { %1032 = vmatpush.msra.mxu0 %v2119_v48  ;;  %1052 = vmatpush.msra.mxu1 %v2122_v4  ;;  %v1469_v48 = vld [vmem:[#allocation2 + $0x8] sm:$0xff] }
 0x305   :  { %952 = vmatpush.msrb.mxu3 %v2223_v0 }
 0x306   :  { %1033 = vmatpush.msra.mxu0 %v2126_v51  ;;  %1053 = vmatpush.msra.mxu1 %v2129_v39  ;;  %v2470_v39 = vld [vmem:[#allocation15_spill] sm:$0xff] }
 0x307   :  { %953 = vmatpush.msrb.mxu3 %v2228_v29 }
 0x308   :  { %1034 = vmatpush.msra.mxu0 %v2133_v53  ;;  %1054 = vmatpush.msra.mxu1 %v2136_v31 }
 0x309   :  { %954 = vmatpush.msrb.mxu3 %v2233_v2 }
 0x30a   :  { %1035 = vmatpush.msra.mxu0 %v2140_v55  ;;  %1055 = vmatpush.msra.mxu1 %v1461_v34  ;;  %v2261_v34 = vadd.f32 %v2474_v23, %v2473_v18 }
 0x30b   :  { %955 = vmatpush.msrb.mxu3 %v2237_v43 }
 0x30c   :  { %1036 = vmatpush.msra.mxu0 %v2145_v63  ;;  %1056 = vmatpush.msra.mxu1 %v1463_v37 }
 0x30d   :  { %956 = vmatpush.msrb.mxu3 %v2241_v15 }
 0x30e   :  { %1037 = vmatpush.msra.mxu0 %v2150_v57  ;;  %1057 = vmatpush.msra.mxu1 %v1465_v41  ;;  %v2471_v57 = vld [vmem:[#allocation14_spill] sm:$0xff] }
 0x30f   :  { %957 = vmatpush.msrb.mxu3 %v2245_v46 }
 0x310   :  { %1038 = vmatpush.msra.mxu0 %v2155_v58  ;;  %1058 = vmatpush.msra.mxu1 %v1467_v44 }
 0x311   :  { %958 = vmatpush.msrb.mxu3 %v2249_v17 }
 0x312   :  { %1039 = vmatpush.msra.mxu0 %v2160_v45  ;;  %1059 = vmatpush.msra.mxu1 %v1469_v48 }
 0x36f   :  { %v711_v4 = vpop.f32.mrf.mxu0 }
 0x370   :  { %v712_v51 = vadd.f32 %v711_v4, %v2467_v26  ;;  %v731_v56 = vpop.f32.mrf.mxu1 }
 0x371   :  { %v732_v47 = vadd.f32 %v731_v56, %v2469_v11 }
 0x372   :  { %v754_v53 = vadd.f32 %v712_v51, %v2470_v39 }
 0x374   :  { %v1310_v31 = vmul.f32 -1.442695, %v754_v53 }
 0x375   :  { %v691_v55 = vpop.f32.mrf.mxu3 }
 0x376   :  { %1368 = vpow2.f32 %v1310_v31  ;;  %v692_v63 = vadd.f32 %v691_v55, %v2465_v14 }
 0x378   :  { %v734_v58 = vadd.f32 %v692_v63, %v2471_v57 }
 0x37a   :  { %v1309_v20 = vmul.f32 -1.442695, %v734_v58 }
 0x37c   :  { %v1369_v30 = vpop.eup %1368  ;;  %1370 = vpow2.f32 %v1309_v20 }
 0x37d   :  { %v758_v27 = vadd.f32 1.0, %v1369_v30 }
 0x37f   :  { %1372 = vrcp.f32 %v758_v27  ;;  %v770_v37 = vand.u32 2147483648, %v758_v27  ;;  %vm764_vm13 = vweird.f32 %v758_v27  ;;  %v768_v44 = vand.u32 2147483647, %v758_v27 }
 0x381   :  { %v771_v51 = vor.u32 1.1754944e-38, %v770_v37  ;;  %vm769_vm15 = vcmp.eq.f32.partialorder %v768_v44, 8.507059e+37 }
 0x382   :  { %v1371_v45 = vpop.eup %1370 }
 0x383   :  { %v738_v28 = vadd.f32 1.0, %v1371_v45 }
 0x385   :  { %1374 = vrcp.f32 %v738_v28  ;;  %v1373_v33 = vpop.eup %1372  ;;  %v750_v5 = vand.u32 2147483648, %v738_v28  ;;  %v748_v52 = vand.u32 2147483647, %v738_v28  ;;  %vm744_vm7 = vweird.f32 %v738_v28 }
 0x386   :  { %v760_v36 = vmul.f32 %v1373_v33, %v758_v27  ;;  %vm765_vm12 = vweird.f32 %v1373_v33 }
 0x387   :  { %v751_v62 = vor.u32 1.1754944e-38, %v750_v5  ;;  %vm749_vm9 = vcmp.eq.f32.partialorder %v748_v52, 8.507059e+37  ;;  %vm766_vm14 = vmor %vm764_vm13, %vm765_vm12 }
 0x388   :  { %v761_v60 = vsub.f32 1.0, %v760_v36 }
 0x38a   :  { %v762_v8 = vmul.f32 %v1373_v33, %v761_v60 }
 0x38b   :  { %v1375_v50 = vpop.eup %1374 }
 0x38c   :  { %v740_v59 = vmul.f32 %v1375_v50, %v738_v28  ;;  %vm745_vm6 = vweird.f32 %v1375_v50  ;;  %v763_v7 = vadd.f32 %v1373_v33, %v762_v8 }
 0x38d   :  { %vm746_vm8 = vmor %vm744_vm7, %vm745_vm6 }
 0x38e   :  { %v741_v3 = vsub.f32 1.0, %v740_v59  ;;  %v767_v4 = vsel %vm766_vm14, %v1373_v33, %v763_v7 }
 0x38f   :  { %v772_v53 = vsel %vm769_vm15, %v771_v51, %v767_v4 }
 0x390   :  { %v742_v61 = vmul.f32 %v1375_v50, %v741_v3  ;;  %v777_v31 = vsub.f32 1.0, %v772_v53  ;;  %v779_v58 = vmul.f32 %v772_v53, %v2171_v25 }
 0x392   :  { %v743_v9 = vadd.f32 %v1375_v50, %v742_v61 }
 0x394   :  { %v747_v1 = vsel %vm746_vm8, %v1375_v50, %v743_v9 }
 0x395   :  { %v752_v13 = vsel %vm749_vm9, %v751_v62, %v747_v1 }
 0x396   :  { %v774_v41 = vmul.f32 %v752_v13, %v732_v47 }
 0x398   :  { %v775_v48 = vadd.f32 %v774_v41, %v2261_v34 }
 0x39a   :  { %1376 = vtanh.f32 %v775_v48 }
 0x3a0   :  { %v1377_v55 = vpop.eup %1376 }
 0x3a1   :  { %v778_v63 = vmul.f32 %v1377_v55, %v777_v31 }
 0x3a3   :  { %v2265_v20 = vadd.f32 %v779_v58, %v778_v63 }
 0x3a5   :  { %797 = vmatmul.f32.vlgmr.msra.gmra.mxu2 %v2265_v20  ;;  %817 = vmatmul.f32.vlgmr.msra.gmra.mxu3 %v2265_v20  ;;  %v896_v37 = vrot.slane %v2265_v20, 6  ;;  %v1156_v54 = vrot.slane %v2265_v20, 2 }
 0x3a6   :  { %837 = vmatmul.f32.vlgmr.msrb.gmra.mxu0 %v2265_v20  ;;  %1064 = vmatpush.msra.mxu2 %v2060_v42 }
 0x3a8   :  { %1065 = vmatpush.msra.mxu2 %v2183_v22 }
 0x3aa   :  { %1066 = vmatpush.msra.mxu2 %v2188_v38 }
 0x3ac   :  { %1067 = vmatpush.msra.mxu2 %v2193_v10 }
 0x3ae   :  { %1068 = vmatpush.msra.mxu2 %v2198_v24 }
 0x3b0   :  { %1069 = vmatpush.msra.mxu2 %v2203_v40 }
 0x3b2   :  { %1070 = vmatpush.msra.mxu2 %v2208_v49 }
 0x3b4   :  { %1071 = vmatpush.msra.mxu2 %v2213_v35 }
 0x3b6   :  { %1072 = vmatpush.msra.mxu2 %v2218_v6 }
 0x3b8   :  { %1073 = vmatpush.msra.mxu2 %v2223_v0 }
 0x3ba   :  { %1074 = vmatpush.msra.mxu2 %v2228_v29 }
 0x3bc   :  { %1075 = vmatpush.msra.mxu2 %v2233_v2 }
 0x3be   :  { %1076 = vmatpush.msra.mxu2 %v2237_v43 }
 0x3c0   :  { %1077 = vmatpush.msra.mxu2 %v2241_v15 }
 0x3c2   :  { %1078 = vmatpush.msra.mxu2 %v2245_v46 }
 0x3c4   :  { %1079 = vmatpush.msra.mxu2 %v2249_v17 }
 0x423   :  { %v838_v27 = vpop.f32.mrf.mxu0 }
 0x424   :  { %v839_v50 = vadd.f32 %v838_v27, %v2469_v11 }
 0x426   :  { %v888_v52 = vrot.slane %v839_v50, 6 }
 0x428   :  { %v798_v42 = vpop.f32.mrf.mxu2  ;;  %v818_v22 = vpop.f32.mrf.mxu3 }
 0x429   :  { %v799_v38 = vadd.f32 %v798_v42, %v2465_v14  ;;  %v819_v10 = vadd.f32 %v818_v22, %v2467_v26 }
 0x42b   :  { %v842_v24 = vrot.slane %v799_v38, 6  ;;  %v865_v40 = vrot.slane %v819_v10, 6 }
 0x42d   :  { %v844_v49 = vadd.f32 %v842_v24, %v2471_v57  ;;  %v867_v35 = vadd.f32 %v865_v40, %v2470_v39 }
 0x42f   :  { %v1311_v6 = vmul.f32 -1.442695, %v844_v49  ;;  %v1312_v0 = vmul.f32 -1.442695, %v867_v35 }
 0x431   :  { %1378 = vpow2.f32 %v1311_v6 }
 0x432   :  { %1380 = vpow2.f32 %v1312_v0 }
 0x437   :  { %v1379_v29 = vpop.eup %1378 }
 0x438   :  { %v1381_v2 = vpop.eup %1380  ;;  %v848_v43 = vadd.f32 1.0, %v1379_v29 }
 0x439   :  { %v871_v15 = vadd.f32 1.0, %v1381_v2 }
 0x43a   :  { %1382 = vrcp.f32 %v848_v43  ;;  %v860_v33 = vand.u32 2147483648, %v848_v43  ;;  %v858_v60 = vand.u32 2147483647, %v848_v43  ;;  %vm854_vm2 = vweird.f32 %v848_v43 }
 0x43b   :  { %1384 = vrcp.f32 %v871_v15  ;;  %v883_v47 = vand.u32 2147483648, %v871_v15  ;;  %vm877_vm7 = vweird.f32 %v871_v15  ;;  %v881_v1 = vand.u32 2147483647, %v871_v15 }
 0x43c   :  { %v861_v61 = vor.u32 1.1754944e-38, %v860_v33  ;;  %vm859_vm4 = vcmp.eq.f32.partialorder %v858_v60, 8.507059e+37 }
 0x43d   :  { %v884_v16 = vor.u32 1.1754944e-38, %v883_v47  ;;  %vm882_vm9 = vcmp.eq.f32.partialorder %v881_v1, 8.507059e+37 }
 0x440   :  { %v1383_v46 = vpop.eup %1382 }
 0x441   :  { %v1385_v17 = vpop.eup %1384  ;;  %v850_v30 = vmul.f32 %v1383_v46, %v848_v43  ;;  %vm855_vm1 = vweird.f32 %v1383_v46 }
 0x442   :  { %v873_v45 = vmul.f32 %v1385_v17, %v871_v15  ;;  %vm856_vm3 = vmor %vm854_vm2, %vm855_vm1  ;;  %vm878_vm6 = vweird.f32 %v1385_v17 }
 0x443   :  { %v851_v28 = vsub.f32 1.0, %v850_v30  ;;  %vm879_vm8 = vmor %vm877_vm7, %vm878_vm6 }
 0x444   :  { %v874_v36 = vsub.f32 1.0, %v873_v45 }
 0x445   :  { %v852_v59 = vmul.f32 %v1383_v46, %v851_v28 }
 0x446   :  { %v875_v3 = vmul.f32 %v1385_v17, %v874_v36 }
 0x447   :  { %v853_v5 = vadd.f32 %v1383_v46, %v852_v59 }
 0x448   :  { %v876_v9 = vadd.f32 %v1385_v17, %v875_v3 }
 0x449   :  { %v857_v8 = vsel %vm856_vm3, %v1383_v46, %v853_v5 }
 0x44a   :  { %v862_v56 = vsel %vm859_vm4, %v861_v61, %v857_v8  ;;  %v880_v13 = vsel %vm879_vm8, %v1385_v17, %v876_v9 }
 0x44b   :  { %v890_v62 = vmul.f32 %v888_v52, %v862_v56  ;;  %v885_v18 = vsel %vm882_vm9, %v884_v16, %v880_v13 }
 0x44c   :  { %v893_v23 = vsub.f32 1.0, %v885_v18  ;;  %v898_v48 = vmul.f32 %v896_v37, %v885_v18 }
 0x44d   :  { %v891_v7 = vadd.f32 %v890_v62, %v2261_v34 }
 0x44f   :  { %1386 = vtanh.f32 %v891_v7 }
 0x455   :  { %v1387_v41 = vpop.eup %1386 }
 0x456   :  { %v894_v44 = vmul.f32 %v1387_v41, %v893_v23 }
 0x458   :  { %v2293_v4 = vadd.f32 %v898_v48, %v894_v44 }
 0x45a   :  { %v901_v51 = vrot.slane %v2293_v4, 2  ;;  %v1017_v1 = vrot.slane %v2293_v4, 6  ;;  %v1148_v37 = vsel %vm1142_vm10, %v2265_v20, %v2293_v4  ;;  %v1326_v20 = vld [vmem:[%s2395_s7] ss:$0 sm:$0xff]  ;;  %s1500_s7 = smov 64  }
 0x45b   :  { %v1327_v4 = vld [vmem:[%s2396_s8] ss:$0 sm:$0xff] }
 0x45c   :  { %919 = vmatmul.f32.vlgmr.msrb.gmra.mxu1 %v901_v51  ;;  %939 = vmatmul.f32.vlgmr.msrb.gmra.mxu2 %v901_v51 }
 0x45d   :  { %959 = vmatmul.f32.vlgmr.msrb.gmra.mxu3 %v901_v51 }
 0x4d9   :  { %v920_v53 = vpop.f32.mrf.mxu1 }
 0x4da   :  { %v921_v31 = vadd.f32 %v920_v53, %v2465_v14 }
 0x4dc   :  { %v964_v55 = vrot.slane %v921_v31, 4 }
 0x4de   :  { %v966_v63 = vadd.f32 %v964_v55, %v2471_v57 }
 0x4df   :  { %v940_v58 = vpop.f32.mrf.mxu2 }
 0x4e0   :  { %v1313_v42 = vmul.f32 -1.442695, %v966_v63  ;;  %v941_v22 = vadd.f32 %v940_v58, %v2467_v26  ;;  %v960_v2 = vpop.f32.mrf.mxu3 }
 0x4e1   :  { %v961_v46 = vadd.f32 %v960_v2, %v2469_v11 }
 0x4e2   :  { %1388 = vpow2.f32 %v1313_v42  ;;  %v987_v38 = vrot.slane %v941_v22, 4 }
 0x4e3   :  { %v1010_v59 = vrot.slane %v961_v46, 4 }
 0x4e4   :  { %v989_v10 = vadd.f32 %v987_v38, %v2470_v39 }
 0x4e6   :  { %v1314_v24 = vmul.f32 -1.442695, %v989_v10  ;;  %v1177_v10 = vld [vmem:[%s2394_s6 + $0x38] sm:$0xff] }
 0x4e7   :  { %1197 = vmatpush.msra.mxu3 %v1177_v10 }
 0x4e8   :  { %v1389_v40 = vpop.eup %1388  ;;  %1390 = vpow2.f32 %v1314_v24 }
 0x4e9   :  { %v970_v49 = vadd.f32 1.0, %v1389_v40 }
 0x4eb   :  { %1392 = vrcp.f32 %v970_v49  ;;  %v982_v15 = vand.u32 2147483648, %v970_v49  ;;  %v980_v30 = vand.u32 2147483647, %v970_v49  ;;  %vm976_vm13 = vweird.f32 %v970_v49 }
 0x4ed   :  { %v983_v33 = vor.u32 1.1754944e-38, %v982_v15  ;;  %vm981_vm15 = vcmp.eq.f32.partialorder %v980_v30, 8.507059e+37 }
 0x4ee   :  { %v1391_v35 = vpop.eup %1390 }
 0x4ef   :  { %v993_v6 = vadd.f32 1.0, %v1391_v35  ;;  %v1173_v35 = vld [vmem:[%s2394_s6 + $0x18] sm:$0xff] }
 0x4f1   :  { %v1393_v0 = vpop.eup %1392  ;;  %1394 = vrcp.f32 %v993_v6  ;;  %v1005_v5 = vand.u32 2147483648, %v993_v6  ;;  %v1003_v52 = vand.u32 2147483647, %v993_v6  ;;  %vm999_vm2 = vweird.f32 %v993_v6 }
 0x4f2   :  { %v972_v29 = vmul.f32 %v1393_v0, %v970_v49  ;;  %vm977_vm12 = vweird.f32 %v1393_v0 }
 0x4f3   :  { %vm978_vm14 = vmor %vm976_vm13, %vm977_vm12  ;;  %v1006_v9 = vor.u32 1.1754944e-38, %v1005_v5  ;;  %vm1004_vm4 = vcmp.eq.f32.partialorder %v1003_v52, 8.507059e+37 }
 0x4f4   :  { %v973_v43 = vsub.f32 1.0, %v972_v29  ;;  %v1170_v29 = vld [vmem:[%s2394_s6] sm:$0xff] }
 0x4f6   :  { %v974_v17 = vmul.f32 %v1393_v0, %v973_v43 }
 0x4f7   :  { %v1395_v27 = vpop.eup %1394 }
 0x4f8   :  { %v995_v45 = vmul.f32 %v1395_v27, %v993_v6  ;;  %v975_v28 = vadd.f32 %v1393_v0, %v974_v17  ;;  %vm1000_vm1 = vweird.f32 %v1395_v27  ;;  %v1172_v6 = vld [vmem:[%s2394_s6 + $0x10] sm:$0xff] }
 0x4f9   :  { %vm1001_vm3 = vmor %vm999_vm2, %vm1000_vm1  ;;  %vm1182_vm1 = vcmask 523264  }
 0x4fa   :  { %v996_v36 = vsub.f32 1.0, %v995_v45  ;;  %v979_v50 = vsel %vm978_vm14, %v1393_v0, %v975_v28  ;;  %v1171_v0 = vld [vmem:[%s2394_s6 + $0x8] sm:$0xff] }
 0x4fb   :  { %v984_v60 = vsel %vm981_vm15, %v983_v33, %v979_v50 }
 0x4fc   :  { %v997_v3 = vmul.f32 %v1395_v27, %v996_v36  ;;  %v1012_v61 = vmul.f32 %v1010_v59, %v984_v60 }
 0x4fe   :  { %v998_v8 = vadd.f32 %v1395_v27, %v997_v3  ;;  %v1013_v56 = vadd.f32 %v1012_v61, %v2261_v34 }
 0x500   :  { %v1002_v62 = vsel %vm1001_vm3, %v1395_v27, %v998_v8  ;;  %1396 = vtanh.f32 %v1013_v56 }
 0x501   :  { %v1007_v47 = vsel %vm1004_vm4, %v1006_v9, %v1002_v62 }
 0x502   :  { %v1015_v7 = vsub.f32 1.0, %v1007_v47  ;;  %v1019_v18 = vmul.f32 %v1017_v1, %v1007_v47 }
 0x506   :  { %v1397_v13 = vpop.eup %1396 }
 0x507   :  { %v1016_v16 = vmul.f32 %v1397_v13, %v1015_v7  ;;  %v1158_v13 = vrot.slane %v2050_v32, 2 }
 0x509   :  { %v2305_v23 = vadd.f32 %v1019_v18, %v1016_v16 }
 0x50b   :  { %v1022_v41 = vrot.slane %v2305_v23, 4  ;;  %v2313_v44 = vsel %vm1144_vm11, %v1148_v37, %v2305_v23  ;;  %v1138_v18 = vrot.slane %v2305_v23, 6  ;;  %v1165_v37 = vsel %vm1142_vm10, %v2171_v25, %v1158_v13 }
 0x50c   :  { %v1154_v32 = vrot.slane %v2305_v23, 2 }
 0x50d   :  { %1040 = vmatmul.f32.vlgmr.msra.gmra.mxu0 %v1022_v41  ;;  %1060 = vmatmul.f32.vlgmr.msra.gmra.mxu1 %v1022_v41 }
 0x50e   :  { %1080 = vmatmul.f32.vlgmr.msra.gmra.mxu2 %v1022_v41 }
 0x58a   :  { %v1041_v48 = vpop.f32.mrf.mxu0  ;;  %v1061_v51 = vpop.f32.mrf.mxu1 }
 0x58b   :  { %v1042_v53 = vadd.f32 %v1041_v48, %v2465_v14  ;;  %v1062_v31 = vadd.f32 %v1061_v51, %v2467_v26  ;;  %v1176_v14 = vld [vmem:[%s2394_s6 + $0x30] sm:$0xff]  ;;  %v1175_v26 = vld [vmem:[%s2394_s6 + $0x28] sm:$0xff] }
 0x58c   :  { %1198 = vmatpush.msra.mxu3 %v1176_v14 }
 0x58d   :  { %v1085_v55 = vrot.slane %v1042_v53, 2  ;;  %v1108_v63 = vrot.slane %v1062_v31, 2  ;;  %v1160_v31 = vrot.slane %v1928_v19, 2 }
 0x58e   :  { %1199 = vmatpush.msra.mxu3 %v1175_v26 }
 0x58f   :  { %v1087_v58 = vadd.f32 %v1085_v55, %v2471_v57  ;;  %v1110_v42 = vadd.f32 %v1108_v63, %v2470_v39  ;;  %v1174_v57 = vld [vmem:[%s2394_s6 + $0x20] sm:$0xff] }
 0x590   :  { %1200 = vmatpush.msra.mxu3 %v1174_v57 }
 0x591   :  { %v1315_v22 = vmul.f32 -1.442695, %v1087_v58  ;;  %v1316_v38 = vmul.f32 -1.442695, %v1110_v42  ;;  %v1081_v17 = vpop.f32.mrf.mxu2 }
 0x592   :  { %1201 = vmatpush.msra.mxu3 %v1173_v35  ;;  %v1082_v28 = vadd.f32 %v1081_v17, %v2469_v11 }
 0x593   :  { %1398 = vpow2.f32 %v1315_v22 }
 0x594   :  { %1400 = vpow2.f32 %v1316_v38  ;;  %1202 = vmatpush.msra.mxu3 %v1172_v6  ;;  %v1131_v5 = vrot.slane %v1082_v28, 2 }
 0x596   :  { %1203 = vmatpush.msra.mxu3 %v1171_v0 }
 0x598   :  { %1204 = vmatpush.msra.mxu3 %v1170_v29 }
 0x599   :  { %v1399_v39 = vpop.eup %1398 }
 0x59a   :  { %v1401_v24 = vpop.eup %1400  ;;  %v1091_v40 = vadd.f32 1.0, %v1399_v39 }
 0x59b   :  { %v1114_v49 = vadd.f32 1.0, %v1401_v24  ;;  %v1499_v24 = vmov 0  }
 0x59c   :  { %1402 = vrcp.f32 %v1091_v40  ;;  %v1103_v45 = vand.u32 2147483648, %v1091_v40  ;;  %v1101_v36 = vand.u32 2147483647, %v1091_v40  ;;  %vm1097_vm7 = vweird.f32 %v1091_v40  ;;  %1324 = vset.pattern.permute.xlu1 %v1499_v24  ;;  %1325 = vset.pattern.permute.xlu0 %v1499_v24 }
 0x59d   :  { %1404 = vrcp.f32 %v1114_v49  ;;  %v1126_v8 = vand.u32 2147483648, %v1114_v49  ;;  %vm1120_vm13 = vweird.f32 %v1114_v49  ;;  %v1124_v9 = vand.u32 2147483647, %v1114_v49 }
 0x59e   :  { %v1104_v60 = vor.u32 1.1754944e-38, %v1103_v45  ;;  %vm1102_vm9 = vcmp.eq.f32.partialorder %v1101_v36, 8.507059e+37 }
 0x59f   :  { %v1127_v47 = vor.u32 1.1754944e-38, %v1126_v8  ;;  %vm1125_vm15 = vcmp.eq.f32.partialorder %v1124_v9, 8.507059e+37 }
 0x5a2   :  { %v1403_v2 = vpop.eup %1402 }
 0x5a3   :  { %v1405_v43 = vpop.eup %1404  ;;  %v1093_v15 = vmul.f32 %v1403_v2, %v1091_v40  ;;  %vm1098_vm6 = vweird.f32 %v1403_v2 }
 0x5a4   :  { %v1116_v46 = vmul.f32 %v1405_v43, %v1114_v49  ;;  %vm1099_vm8 = vmor %vm1097_vm7, %vm1098_vm6  ;;  %vm1121_vm12 = vweird.f32 %v1405_v43 }
 0x5a5   :  { %v1094_v30 = vsub.f32 1.0, %v1093_v15  ;;  %vm1122_vm14 = vmor %vm1120_vm13, %vm1121_vm12 }
 0x5a6   :  { %v1117_v27 = vsub.f32 1.0, %v1116_v46 }
 0x5a7   :  { %v1095_v33 = vmul.f32 %v1403_v2, %v1094_v30 }
 0x5a8   :  { %v1118_v50 = vmul.f32 %v1405_v43, %v1117_v27 }
 0x5a9   :  { %v1096_v59 = vadd.f32 %v1403_v2, %v1095_v33 }
 0x5aa   :  { %v1119_v52 = vadd.f32 %v1405_v43, %v1118_v50 }
 0x5ab   :  { %v1100_v3 = vsel %vm1099_vm8, %v1403_v2, %v1096_v59 }
 0x5ac   :  { %v1105_v61 = vsel %vm1102_vm9, %v1104_v60, %v1100_v3  ;;  %v1123_v62 = vsel %vm1122_vm14, %v1405_v43, %v1119_v52 }
 0x5ad   :  { %v1133_v56 = vmul.f32 %v1131_v5, %v1105_v61  ;;  %v1128_v7 = vsel %vm1125_vm15, %v1127_v47, %v1123_v62 }
 0x5ae   :  { %v1136_v16 = vsub.f32 1.0, %v1128_v7  ;;  %v1140_v51 = vmul.f32 %v1138_v18, %v1128_v7 }
 0x5af   :  { %v1134_v11 = vadd.f32 %v1133_v56, %v2261_v34  ;;  %v1166_v34 = vsel %vm1144_vm11, %v1165_v37, %v546_v21 }
 0x5b0   :  { %v1167_v25 = vsel %vm1146_vm5, %v1166_v34, %v1160_v31 }
 0x5b1   :  { %1406 = vtanh.f32 %v1134_v11 }
 0x5b7   :  { %v1407_v41 = vpop.eup %1406 }
 0x5b8   :  { %v1137_v48 = vmul.f32 %v1407_v41, %v1136_v16 }
 0x5ba   :  { %v2352_v53 = vadd.f32 %v1140_v51, %v1137_v48 }
 0x5bc   :  { %v1152_v55 = vrot.slane %v2352_v53, 6  ;;  %v1150_v63 = vsel %vm1146_vm5, %v2313_v44, %v2352_v53 }
 0x5bd   :  { %v1169_v58 = vsel %vm119_vm0, %v1150_v63, %v1167_v25 }
 0x5be   :  { %v1162_v21 = vsel %vm1142_vm10, %v1152_v55, %v1154_v32 }
 0x5bf   :  { %v1163_v19 = vsel %vm1144_vm11, %v1162_v21, %v1017_v1 }
 0x5c0   :  { %v1164_v23 = vsel %vm1146_vm5, %v1163_v19, %v1156_v54 }
 0x5c1   :  { %v1168_v44 = vsel %vm119_vm0, %v2175_v12, %v1164_v23 }
 0x5c2   :  { %1317 = vmatmul.msk.f32.vlgmr.msra.gmra.mxu3 %vm1182_vm1, %v1168_v44 }
 0x5ca   :  { %1318 = vmatmul.msk.f32.gmra.mxu3 %vm1182_vm1, %v1169_v58 }
 0x645   :  { %v1206_v42 = vpop.f32.mrf.mxu3 }
 0x646   :  { %v1207_v22 = vadd.f32 %v1326_v20, %v1206_v42 }
 0x648   :  { %1408 = vtanh.f32 %v1207_v22 }
 0x64d   :  { %v1209_v1 = vpop.f32.mrf.mxu3 }
 0x64e   :  { %v1409_v38 = vpop.eup %1408  ;;  %v1210_v10 = vadd.f32 %v1326_v20, %v1209_v1 }
 0x64f   :  { %v1218_v14 = vmul.f32 %v1409_v38, %v1327_v4 }
 0x650   :  { %1410 = vtanh.f32 %v1210_v10 }
 0x651   :  { %v1220_v12 = vsel %vm1182_vm1, %v1218_v14, 0.0 }
 0x652   :  { %1221 = vadd.xlane.f32.xlu0 %v1220_v12 }
 0x656   :  { %v1411_v26 = vpop.eup %1410 }
 0x657   :  { %v1219_v39 = vmul.f32 %v1411_v26, %v1327_v4 }
 0x659   :  { %v1223_v57 = vsel %vm1182_vm1, %v1219_v39, 0.0 }
 0x65a   :  { %1224 = vadd.xlane.f32.xlu0 %v1223_v57 }
 0x6c5   :  { %v1222_v40 = vpop.xlane.xlu0 %1221 }
 0x6c6   :  { %1412 = vtanh.f32 %v1222_v40 }
 0x6cc   :  { %v1413_v49 = vpop.eup %1412 }
 0x6cd   :  { %v1228_v35 = vmul.f32 1.442695, %v1413_v49  ;;  %v1225_v6 = vpop.xlane.xlu0 %1224 }
 0x6ce   :  { %1414 = vtanh.f32 %v1225_v6 }
 0x6cf   :  { %1416 = vpow2.f32 %v1228_v35 }
 0x6d4   :  { %v1415_v0 = vpop.eup %1414 }
 0x6d5   :  { %v1417_v29 = vpop.eup %1416  ;;  %v1230_v2 = vmul.f32 1.442695, %v1415_v0 }
 0x6d6   :  { %v1240_v43 = vrot.slane %v1417_v29, 2  ;;  %v1232_v15 = vmul.f32 %v1417_v29, %v1168_v44  ;;  %v1246_v17 = vrot.slane %v1417_v29, 4  ;;  %v1252_v45 = vrot.slane %v1417_v29, 6 }
 0x6d7   :  { %1418 = vpow2.f32 %v1230_v2 }
 0x6d8   :  { %v1242_v46 = vadd.f32 %v1417_v29, %v1240_v43  ;;  %v1236_v30 = vrot.slane %v1232_v15, 2  ;;  %v1243_v33 = vrot.slane %v1232_v15, 4  ;;  %v1249_v60 = vrot.slane %v1232_v15, 6 }
 0x6da   :  { %v1248_v27 = vadd.f32 %v1246_v17, %v1242_v46  ;;  %v1238_v28 = vadd.f32 %v1236_v30, %v1232_v15 }
 0x6dc   :  { %v1254_v36 = vadd.f32 %v1252_v45, %v1248_v27  ;;  %v1245_v50 = vadd.f32 %v1243_v33, %v1238_v28 }
 0x6dd   :  { %v1419_v59 = vpop.eup %1418 }
 0x6de   :  { %v1257_v3 = vadd.f32 %v1419_v59, %v1254_v36  ;;  %v1263_v5 = vrot.slane %v1419_v59, 2  ;;  %v1251_v61 = vadd.f32 %v1249_v60, %v1245_v50  ;;  %v1255_v52 = vmul.f32 %v1419_v59, %v1169_v58 }
 0x6df   :  { %v1269_v56 = vrot.slane %v1419_v59, 4  ;;  %v1275_v47 = vrot.slane %v1419_v59, 6 }
 0x6e0   :  { %v1265_v8 = vadd.f32 %v1263_v5, %v1257_v3  ;;  %v1256_v9 = vadd.f32 %v1255_v52, %v1251_v61  ;;  %v1259_v11 = vrot.slane %v1255_v52, 2  ;;  %v1266_v13 = vrot.slane %v1255_v52, 4 }
 0x6e1   :  { %v1272_v37 = vrot.slane %v1255_v52, 6 }
 0x6e2   :  { %v1271_v62 = vadd.f32 %v1269_v56, %v1265_v8  ;;  %v1261_v7 = vadd.f32 %v1259_v11, %v1256_v9 }
 0x6e4   :  { %v1277_v16 = vadd.f32 %v1275_v47, %v1271_v62  ;;  %v1268_v18 = vadd.f32 %v1266_v13, %v1261_v7 }
 0x6e6   :  { %1420 = vrcp.f32 %v1277_v16  ;;  %v1274_v41 = vadd.f32 %v1272_v37, %v1268_v18 }
 0x6ec   :  { %v1421_v48 = vpop.eup %1420 }
 0x6ed   :  { %1281 = vperm.xlu1 %1324, %v1421_v48  }
 0x6f5   :  { %1285 = vrot.lane.b32.xlu1 %v1152_v55, %s1500_s7 }
 0x75f   :  { %v1282_v51 = vpop.permute.xlu1 %1281 }
 0x760   :  { %v1284_v34 = vmul.f32 %v1282_v51, %v1274_v41 }
 0x767   :  { %v1286_v31 = vpop.permute.xlu1 %1285 }
 0x768   :  { %v1288_v32 = vsel %vm1182_vm1, %v1284_v34, %v1286_v31 }
 0x769   :  { %1289 = vst [vmem:[%s2397_s9] sm:$0x3] %v1288_v32 }
 0x76a   :  { %1294 = vsyncpa [#allocation3], 1 }

</bundles_post_ra>
